<compile_context>
chip_gen: v7x
topology: tpu7x:2x2x1
jax: 0.10.0
libtpu: 0.0.40
codegen_flags: <defaults>
</compile_context>

<pallas_src>
import jax
import jax.numpy as jnp
import numpy as np
from jax import lax
from jax.experimental import pallas as pl
from jax.experimental.pallas import tpu as pltpu


def _round_up(x, m):
    return (x + m - 1) // m * m


def _encoder_lstm_kernel(ids_ref,     # (T,)  int32   SMEM
                         emb_ref,     # (Vp, Hp)      VMEM (padded table)
                         wx_ref,      # (Hp, 4Hp)     VMEM
                         wh_ref,      # (Hp, 4Hp)     VMEM
                         b_ref,       # (1, 4Hp)      VMEM
                         h0_ref,      # (1, Hp)       VMEM
                         c0_ref,      # (1, Hp)       VMEM
                         h_hist_ref,  # out: (T, Hp)  h at every step
                         c_fin_ref,   # out: (1, Hp)  final cell state
                         zx_sc):      # scratch: (Vp, 4Hp) f32
    T = h_hist_ref.shape[0]
    Hp = h0_ref.shape[1]

    # Hoist the whole x path (embedding lookup + x-linear + bias) off the
    # serial chain: one batched MXU push over the (tiny) vocab.
    zx_sc[...] = (jnp.dot(emb_ref[...], wx_ref[...],
                          preferred_element_type=jnp.float32) + b_ref[...])

    def step(t, carry):
        h, c = carry
        tok = ids_ref[t]                                    # SMEM scalar read
        zx = zx_sc[pl.ds(tok, 1), :]                        # (1, 4Hp) gather
        z = zx + jnp.dot(h, wh_ref[...],
                         preferred_element_type=jnp.float32)
        # Gate order [f, i, c, o]; each gate is a tile-aligned 128-lane block.
        f = jax.nn.sigmoid(z[:, 0 * Hp:1 * Hp])
        i = jax.nn.sigmoid(z[:, 1 * Hp:2 * Hp])
        ct = jnp.tanh(z[:, 2 * Hp:3 * Hp])
        o = jax.nn.sigmoid(z[:, 3 * Hp:4 * Hp])
        c_new = f * c + i * ct
        h_new = o * jnp.tanh(c_new)
        h_hist_ref[pl.ds(t, 1), :] = h_new                  # lane-dense row
        return h_new, c_new

    _, c_fin = lax.fori_loop(0, T, step, (h0_ref[...], c0_ref[...]),
                             unroll=True)
    c_fin_ref[...] = c_fin


def encoder_lstm_encode(tokens, state, params):
    """Run the EncoderLSTM over a whole token sequence in ONE pallas_call.

    tokens: (T,) int token ids.  state: (h0, c0), each (1, H) float32.
    Returns (outputs, (h_T, c_T)) where outputs is (T, H) -- h at every step.
    """
    h0, c0 = state
    emb = params["embedding"]
    wx, wh, b = params["w_x"], params["w_h"], params["b"]

    T = int(tokens.shape[0])
    V, H = emb.shape
    Hp = _round_up(H, 128)      # lane-align gates & the output slab
    Vp = _round_up(V, 8)        # sublane-align the projected table

    # Layout plumbing (zero-padding) -- each gate gets its own 128-lane block.
    def pad_gate_cols(w):
        out = jnp.zeros((w.shape[0], 4 * Hp), jnp.float32)
        for g in range(4):
            out = out.at[:, g * Hp:g * Hp + H].set(w[:, g * H:(g + 1) * H])
        return out

    emb_p = jnp.zeros((Vp, Hp), jnp.float32).at[:V, :H].set(emb)
    wx_p = jnp.zeros((Hp, 4 * Hp), jnp.float32).at[:H, :].set(pad_gate_cols(wx))
    wh_p = jnp.zeros((Hp, 4 * Hp), jnp.float32).at[:H, :].set(pad_gate_cols(wh))
    b_p = pad_gate_cols(b)
    h0_p = jnp.zeros((1, Hp), jnp.float32).at[:, :H].set(h0)
    c0_p = jnp.zeros((1, Hp), jnp.float32).at[:, :H].set(c0)

    vmem = pltpu.MemorySpace.VMEM
    h_hist, c_fin = pl.pallas_call(
        _encoder_lstm_kernel,
        out_shape=(jax.ShapeDtypeStruct((T, Hp), jnp.float32),
                   jax.ShapeDtypeStruct((1, Hp), jnp.float32)),
        in_specs=[
            pl.BlockSpec(memory_space=pltpu.MemorySpace.SMEM),  # token ids
            pl.BlockSpec(memory_space=vmem),                    # emb (padded)
            pl.BlockSpec(memory_space=vmem),                    # W_x
            pl.BlockSpec(memory_space=vmem),                    # W_h
            pl.BlockSpec(memory_space=vmem),                    # b
            pl.BlockSpec(memory_space=vmem),                    # h0
            pl.BlockSpec(memory_space=vmem),                    # c0
        ],
        out_specs=(pl.BlockSpec(memory_space=vmem),
                   pl.BlockSpec(memory_space=vmem)),
        scratch_shapes=[pltpu.VMEM((Vp, 4 * Hp), jnp.float32)],
    )(tokens.astype(jnp.int32), emb_p, wx_p, wh_p, b_p, h0_p, c0_p)

    outputs = h_hist[:, :H]
    h_final = h_hist[T - 1:T, :H]
    c_final = c_fin[:, :H]
    return outputs, (h_final, c_final)


def encoder_lstm_forward(token, state, params):
    """Single-step API matching EncoderLSTM.forward(x, state) exactly.

    NOTE: for decode loops prefer encoder_lstm_encode (one dispatch per
    sequence); a per-token pallas_call dispatch dwarfs one LSTM step.
    """
    tokens = jnp.reshape(jnp.asarray(token, jnp.int32), (1,))
    outputs, (h, c) = encoder_lstm_encode(tokens, state, params)
    return outputs, (h, c)


def init_params(key, input_dim, hidden_dim):
    """Deterministic synthetic parameters matching the PyTorch shapes.

    Gate order is [f, i, c, o].  To import real torch weights:
      w_x[:, g*H:(g+1)*H] = lin_g.weight.T[:H, :]   (x half of cat([x, h]))
      w_h[:, g*H:(g+1)*H] = lin_g.weight.T[H:, :]   (h half)
      b[0,  g*H:(g+1)*H]  = lin_g.bias
    """
    H = hidden_dim
    k_emb, k_wx, k_wh, k_b = jax.random.split(key, 4)
    bound = 1.0 / np.sqrt(2 * H)   # nn.Linear default bound, in_features = 2H
    return {
        "embedding": jax.random.normal(k_emb, (input_dim, H), jnp.float32),
        "w_x": jax.random.uniform(k_wx, (H, 4 * H), jnp.float32, -bound, bound),
        "w_h": jax.random.uniform(k_wh, (H, 4 * H), jnp.float32, -bound, bound),
        "b": jax.random.uniform(k_b, (1, 4 * H), jnp.float32, -bound, bound),
    }


def reference_encode(tokens, state, params):
    """Pure-JAX reference with identical semantics (for verification)."""
    h, c = state
    H = h.shape[1]
    outs = []
    for t in range(tokens.shape[0]):
        x = params["embedding"][tokens[t]][None, :]
        z = x @ params["w_x"] + h @ params["w_h"] + params["b"]
        f = jax.nn.sigmoid(z[:, 0 * H:1 * H])
        i = jax.nn.sigmoid(z[:, 1 * H:2 * H])
        ct = jnp.tanh(z[:, 2 * H:3 * H])
        o = jax.nn.sigmoid(z[:, 3 * H:4 * H])
        c = f * c + i * ct
        h = o * jnp.tanh(c)
        outs.append(h)
    return jnp.concatenate(outs, axis=0), (h, c)


if __name__ == "__main__":
    input_dim = 16    # vocab size V
    hidden_dim = 32   # H
    seq_len = 8       # T

    key = jax.random.PRNGKey(0)
    k_params, k_tok, k_h, k_c = jax.random.split(key, 4)
    params = init_params(k_params, input_dim, hidden_dim)

    tokens = jax.random.randint(k_tok, (seq_len,), 0, input_dim,
                                dtype=jnp.int32)
    # init_hidden() would be zeros; use small random values so f*c is exercised.
    h0 = 0.1 * jax.random.normal(k_h, (1, hidden_dim), jnp.float32)
    c0 = 0.1 * jax.random.normal(k_c, (1, hidden_dim), jnp.float32)

    # Full-sequence fused kernel: ONE pallas_call for all T steps.
    outs, (h_T, c_T) = encoder_lstm_encode(tokens, (h0, c0), params)
    jax.block_until_ready((outs, h_T, c_T))

    outs_ref, (h_ref, c_ref) = reference_encode(tokens, (h0, c0), params)
    np.testing.assert_allclose(np.asarray(outs), np.asarray(outs_ref),
                               rtol=1e-5, atol=2e-5)
    np.testing.assert_allclose(np.asarray(h_T), np.asarray(h_ref),
                               rtol=1e-5, atol=2e-5)
    np.testing.assert_allclose(np.asarray(c_T), np.asarray(c_ref),
                               rtol=1e-5, atol=2e-5)

    # Single-step API: matches EncoderLSTM.forward(token, state) semantics.
    out1, (h1, c1) = encoder_lstm_forward(tokens[0], (h0, c0), params)
    jax.block_until_ready((out1, h1, c1))
    np.testing.assert_allclose(np.asarray(out1), np.asarray(outs_ref[0:1]),
                               rtol=1e-5, atol=2e-5)

    print("KERNEL_OK")
</pallas_src>

<mosaic_0001>
module attributes {stable_mosaic.version = 11 : i64} {
  func.func @_encoder_lstm_kernel(%arg0: memref<8xi32, #tpu.memory_space<smem>>, %arg1: memref<16x128xf32, #tpu.memory_space<vmem>>, %arg2: memref<128x512xf32, #tpu.memory_space<vmem>>, %arg3: memref<128x512xf32, #tpu.memory_space<vmem>>, %arg4: memref<1x512xf32, #tpu.memory_space<vmem>>, %arg5: memref<1x128xf32, #tpu.memory_space<vmem>>, %arg6: memref<1x128xf32, #tpu.memory_space<vmem>>, %arg7: memref<8x128xf32, #tpu.memory_space<vmem>>, %arg8: memref<1x128xf32, #tpu.memory_space<vmem>>, %arg9: memref<16x512xf32, #tpu.memory_space<vmem>>) attributes {dimension_semantics = [], scalar_prefetch = 0 : i64, scratch_operands = 1 : i64, tpu.core_type = #tpu.core_type<tc>} {
    %c0 = arith.constant 0 : index
    %c0_0 = arith.constant 0 : index
    %0 = vector.load %arg1[%c0, %c0_0] : memref<16x128xf32, #tpu.memory_space<vmem>>, vector<16x128xf32>
    %c0_1 = arith.constant 0 : index
    %c0_2 = arith.constant 0 : index
    %1 = vector.load %arg2[%c0_1, %c0_2] : memref<128x512xf32, #tpu.memory_space<vmem>>, vector<128x512xf32>
    %cst = arith.constant dense<0.000000e+00> : vector<16x512xf32>
    %2 = tpu.matmul %0, %1, %cst {dimension_numbers = #tpu.dot_dimension_numbers<[1], [0], [0], [1], [0, 0, 1, 1], [], []>} : vector<16x128xf32>, vector<128x512xf32>, vector<16x512xf32> -> vector<16x512xf32>
    %c0_3 = arith.constant 0 : index
    %c0_4 = arith.constant 0 : index
    %3 = vector.load %arg4[%c0_3, %c0_4] : memref<1x512xf32, #tpu.memory_space<vmem>>, vector<1x512xf32>
    %4 = vector.broadcast %3 : vector<1x512xf32> to vector<16x512xf32>
    %5 = arith.addf %2, %4 : vector<16x512xf32>
    %c0_5 = arith.constant 0 : index
    %c0_6 = arith.constant 0 : index
    %6 = vector.load %arg9[%c0_5, %c0_6] : memref<16x512xf32, #tpu.memory_space<vmem>>, vector<16x512xf32>
    tpu.vector_store %arg9[%c0_5, %c0_6], %5 {strides = array<i32>} : memref<16x512xf32, #tpu.memory_space<vmem>>, vector<16x512xf32>,
    %c0_7 = arith.constant 0 : index
    %c0_8 = arith.constant 0 : index
    %7 = vector.load %arg5[%c0_7, %c0_8] : memref<1x128xf32, #tpu.memory_space<vmem>>, vector<1x128xf32>
    %c0_9 = arith.constant 0 : index
    %c0_10 = arith.constant 0 : index
    %8 = vector.load %arg6[%c0_9, %c0_10] : memref<1x128xf32, #tpu.memory_space<vmem>>, vector<1x128xf32>
    %c0_i32 = arith.constant 0 : i32
    %9 = arith.index_cast %c0_i32 : i32 to index
    %10 = memref.load %arg0[%9] : memref<8xi32, #tpu.memory_space<smem>>
    %11 = arith.index_cast %10 : i32 to index
    %c0_11 = arith.constant 0 : index
    %12 = vector.load %arg9[%11, %c0_11] : memref<16x512xf32, #tpu.memory_space<vmem>>, vector<1x512xf32>
    %c0_12 = arith.constant 0 : index
    %c0_13 = arith.constant 0 : index
    %13 = vector.load %arg3[%c0_12, %c0_13] : memref<128x512xf32, #tpu.memory_space<vmem>>, vector<128x512xf32>
    %cst_14 = arith.constant dense<0.000000e+00> : vector<1x512xf32>
    %14 = tpu.matmul %7, %13, %cst_14 {dimension_numbers = #tpu.dot_dimension_numbers<[1], [0], [0], [1], [0, 0, 1, 1], [], []>} : vector<1x128xf32>, vector<128x512xf32>, vector<1x512xf32> -> vector<1x512xf32>
    %15 = arith.addf %12, %14 : vector<1x512xf32>
    %16 = vector.extract_strided_slice %15 {offsets = [0, 0], sizes = [1, 128], strides = [1, 1]} : vector<1x512xf32> to vector<1x128xf32>
    %17 = arith.negf %16 : vector<1x128xf32>
    %18 = math.exp %17 : vector<1x128xf32>
    %cst_15 = arith.constant 1.000000e+00 : f32
    %19 = vector.broadcast %cst_15 : f32 to vector<1x128xf32>
    %20 = arith.addf %19, %18 : vector<1x128xf32>
    %21 = arith.divf %19, %20 : vector<1x128xf32>
    %22 = vector.extract_strided_slice %15 {offsets = [0, 128], sizes = [1, 128], strides = [1, 1]} : vector<1x512xf32> to vector<1x128xf32>
    %23 = arith.negf %22 : vector<1x128xf32>
    %24 = math.exp %23 : vector<1x128xf32>
    %cst_16 = arith.constant 1.000000e+00 : f32
    %25 = vector.broadcast %cst_16 : f32 to vector<1x128xf32>
    %26 = arith.addf %25, %24 : vector<1x128xf32>
    %27 = arith.divf %25, %26 : vector<1x128xf32>
    %28 = vector.extract_strided_slice %15 {offsets = [0, 256], sizes = [1, 128], strides = [1, 1]} : vector<1x512xf32> to vector<1x128xf32>
    %29 = math.tanh %28 : vector<1x128xf32>
    %30 = vector.extract_strided_slice %15 {offsets = [0, 384], sizes = [1, 128], strides = [1, 1]} : vector<1x512xf32> to vector<1x128xf32>
    %31 = arith.negf %30 : vector<1x128xf32>
    %32 = math.exp %31 : vector<1x128xf32>
    %cst_17 = arith.constant 1.000000e+00 : f32
    %33 = vector.broadcast %cst_17 : f32 to vector<1x128xf32>
    %34 = arith.addf %33, %32 : vector<1x128xf32>
    %35 = arith.divf %33, %34 : vector<1x128xf32>
    %36 = arith.mulf %21, %8 : vector<1x128xf32>
    %37 = arith.mulf %27, %29 : vector<1x128xf32>
    %38 = arith.addf %36, %37 : vector<1x128xf32>
    %39 = math.tanh %38 : vector<1x128xf32>
    %40 = arith.mulf %35, %39 : vector<1x128xf32>
    %41 = arith.index_cast %c0_i32 : i32 to index
    %c0_18 = arith.constant 0 : index
    %42 = vector.load %arg7[%41, %c0_18] : memref<8x128xf32, #tpu.memory_space<vmem>>, vector<1x128xf32>
    tpu.vector_store %arg7[%41, %c0_18], %40 {strides = array<i32>} : memref<8x128xf32, #tpu.memory_space<vmem>>, vector<1x128xf32>,
    %c1_i32 = arith.constant 1 : i32
    %43 = arith.index_cast %c1_i32 : i32 to index
    %44 = memref.load %arg0[%43] : memref<8xi32, #tpu.memory_space<smem>>
    %45 = arith.index_cast %44 : i32 to index
    %c0_19 = arith.constant 0 : index
    %46 = vector.load %arg9[%45, %c0_19] : memref<16x512xf32, #tpu.memory_space<vmem>>, vector<1x512xf32>
    %c0_20 = arith.constant 0 : index
    %c0_21 = arith.constant 0 : index
    %47 = vector.load %arg3[%c0_20, %c0_21] : memref<128x512xf32, #tpu.memory_space<vmem>>, vector<128x512xf32>
    %cst_22 = arith.constant dense<0.000000e+00> : vector<1x512xf32>
    %48 = tpu.matmul %40, %47, %cst_22 {dimension_numbers = #tpu.dot_dimension_numbers<[1], [0], [0], [1], [0, 0, 1, 1], [], []>} : vector<1x128xf32>, vector<128x512xf32>, vector<1x512xf32> -> vector<1x512xf32>
    %49 = arith.addf %46, %48 : vector<1x512xf32>
    %50 = vector.extract_strided_slice %49 {offsets = [0, 0], sizes = [1, 128], strides = [1, 1]} : vector<1x512xf32> to vector<1x128xf32>
    %51 = arith.negf %50 : vector<1x128xf32>
    %52 = math.exp %51 : vector<1x128xf32>
    %cst_23 = arith.constant 1.000000e+00 : f32
    %53 = vector.broadcast %cst_23 : f32 to vector<1x128xf32>
    %54 = arith.addf %53, %52 : vector<1x128xf32>
    %55 = arith.divf %53, %54 : vector<1x128xf32>
    %56 = vector.extract_strided_slice %49 {offsets = [0, 128], sizes = [1, 128], strides = [1, 1]} : vector<1x512xf32> to vector<1x128xf32>
    %57 = arith.negf %56 : vector<1x128xf32>
    %58 = math.exp %57 : vector<1x128xf32>
    %cst_24 = arith.constant 1.000000e+00 : f32
    %59 = vector.broadcast %cst_24 : f32 to vector<1x128xf32>
    %60 = arith.addf %59, %58 : vector<1x128xf32>
    %61 = arith.divf %59, %60 : vector<1x128xf32>
    %62 = vector.extract_strided_slice %49 {offsets = [0, 256], sizes = [1, 128], strides = [1, 1]} : vector<1x512xf32> to vector<1x128xf32>
    %63 = math.tanh %62 : vector<1x128xf32>
    %64 = vector.extract_strided_slice %49 {offsets = [0, 384], sizes = [1, 128], strides = [1, 1]} : vector<1x512xf32> to vector<1x128xf32>
    %65 = arith.negf %64 : vector<1x128xf32>
    %66 = math.exp %65 : vector<1x128xf32>
    %cst_25 = arith.constant 1.000000e+00 : f32
    %67 = vector.broadcast %cst_25 : f32 to vector<1x128xf32>
    %68 = arith.addf %67, %66 : vector<1x128xf32>
    %69 = arith.divf %67, %68 : vector<1x128xf32>
    %70 = arith.mulf %55, %38 : vector<1x128xf32>
    %71 = arith.mulf %61, %63 : vector<1x128xf32>
    %72 = arith.addf %70, %71 : vector<1x128xf32>
    %73 = math.tanh %72 : vector<1x128xf32>
    %74 = arith.mulf %69, %73 : vector<1x128xf32>
    %75 = arith.index_cast %c1_i32 : i32 to index
    %c0_26 = arith.constant 0 : index
    %76 = vector.load %arg7[%75, %c0_26] : memref<8x128xf32, #tpu.memory_space<vmem>>, vector<1x128xf32>
    tpu.vector_store %arg7[%75, %c0_26], %74 {strides = array<i32>} : memref<8x128xf32, #tpu.memory_space<vmem>>, vector<1x128xf32>,
    %c2_i32 = arith.constant 2 : i32
    %77 = arith.index_cast %c2_i32 : i32 to index
    %78 = memref.load %arg0[%77] : memref<8xi32, #tpu.memory_space<smem>>
    %79 = arith.index_cast %78 : i32 to index
    %c0_27 = arith.constant 0 : index
    %80 = vector.load %arg9[%79, %c0_27] : memref<16x512xf32, #tpu.memory_space<vmem>>, vector<1x512xf32>
    %c0_28 = arith.constant 0 : index
    %c0_29 = arith.constant 0 : index
    %81 = vector.load %arg3[%c0_28, %c0_29] : memref<128x512xf32, #tpu.memory_space<vmem>>, vector<128x512xf32>
    %cst_30 = arith.constant dense<0.000000e+00> : vector<1x512xf32>
    %82 = tpu.matmul %74, %81, %cst_30 {dimension_numbers = #tpu.dot_dimension_numbers<[1], [0], [0], [1], [0, 0, 1, 1], [], []>} : vector<1x128xf32>, vector<128x512xf32>, vector<1x512xf32> -> vector<1x512xf32>
    %83 = arith.addf %80, %82 : vector<1x512xf32>
    %84 = vector.extract_strided_slice %83 {offsets = [0, 0], sizes = [1, 128], strides = [1, 1]} : vector<1x512xf32> to vector<1x128xf32>
    %85 = arith.negf %84 : vector<1x128xf32>
    %86 = math.exp %85 : vector<1x128xf32>
    %cst_31 = arith.constant 1.000000e+00 : f32
    %87 = vector.broadcast %cst_31 : f32 to vector<1x128xf32>
    %88 = arith.addf %87, %86 : vector<1x128xf32>
    %89 = arith.divf %87, %88 : vector<1x128xf32>
    %90 = vector.extract_strided_slice %83 {offsets = [0, 128], sizes = [1, 128], strides = [1, 1]} : vector<1x512xf32> to vector<1x128xf32>
    %91 = arith.negf %90 : vector<1x128xf32>
    %92 = math.exp %91 : vector<1x128xf32>
    %cst_32 = arith.constant 1.000000e+00 : f32
    %93 = vector.broadcast %cst_32 : f32 to vector<1x128xf32>
    %94 = arith.addf %93, %92 : vector<1x128xf32>
    %95 = arith.divf %93, %94 : vector<1x128xf32>
    %96 = vector.extract_strided_slice %83 {offsets = [0, 256], sizes = [1, 128], strides = [1, 1]} : vector<1x512xf32> to vector<1x128xf32>
    %97 = math.tanh %96 : vector<1x128xf32>
    %98 = vector.extract_strided_slice %83 {offsets = [0, 384], sizes = [1, 128], strides = [1, 1]} : vector<1x512xf32> to vector<1x128xf32>
    %99 = arith.negf %98 : vector<1x128xf32>
    %100 = math.exp %99 : vector<1x128xf32>
    %cst_33 = arith.constant 1.000000e+00 : f32
    %101 = vector.broadcast %cst_33 : f32 to vector<1x128xf32>
    %102 = arith.addf %101, %100 : vector<1x128xf32>
    %103 = arith.divf %101, %102 : vector<1x128xf32>
    %104 = arith.mulf %89, %72 : vector<1x128xf32>
    %105 = arith.mulf %95, %97 : vector<1x128xf32>
    %106 = arith.addf %104, %105 : vector<1x128xf32>
    %107 = math.tanh %106 : vector<1x128xf32>
    %108 = arith.mulf %103, %107 : vector<1x128xf32>
    %109 = arith.index_cast %c2_i32 : i32 to index
    %c0_34 = arith.constant 0 : index
    %110 = vector.load %arg7[%109, %c0_34] : memref<8x128xf32, #tpu.memory_space<vmem>>, vector<1x128xf32>
    tpu.vector_store %arg7[%109, %c0_34], %108 {strides = array<i32>} : memref<8x128xf32, #tpu.memory_space<vmem>>, vector<1x128xf32>,
    %c3_i32 = arith.constant 3 : i32
    %111 = arith.index_cast %c3_i32 : i32 to index
    %112 = memref.load %arg0[%111] : memref<8xi32, #tpu.memory_space<smem>>
    %113 = arith.index_cast %112 : i32 to index
    %c0_35 = arith.constant 0 : index
    %114 = vector.load %arg9[%113, %c0_35] : memref<16x512xf32, #tpu.memory_space<vmem>>, vector<1x512xf32>
    %c0_36 = arith.constant 0 : index
    %c0_37 = arith.constant 0 : index
    %115 = vector.load %arg3[%c0_36, %c0_37] : memref<128x512xf32, #tpu.memory_space<vmem>>, vector<128x512xf32>
    %cst_38 = arith.constant dense<0.000000e+00> : vector<1x512xf32>
    %116 = tpu.matmul %108, %115, %cst_38 {dimension_numbers = #tpu.dot_dimension_numbers<[1], [0], [0], [1], [0, 0, 1, 1], [], []>} : vector<1x128xf32>, vector<128x512xf32>, vector<1x512xf32> -> vector<1x512xf32>
    %117 = arith.addf %114, %116 : vector<1x512xf32>
    %118 = vector.extract_strided_slice %117 {offsets = [0, 0], sizes = [1, 128], strides = [1, 1]} : vector<1x512xf32> to vector<1x128xf32>
    %119 = arith.negf %118 : vector<1x128xf32>
    %120 = math.exp %119 : vector<1x128xf32>
    %cst_39 = arith.constant 1.000000e+00 : f32
    %121 = vector.broadcast %cst_39 : f32 to vector<1x128xf32>
    %122 = arith.addf %121, %120 : vector<1x128xf32>
    %123 = arith.divf %121, %122 : vector<1x128xf32>
    %124 = vector.extract_strided_slice %117 {offsets = [0, 128], sizes = [1, 128], strides = [1, 1]} : vector<1x512xf32> to vector<1x128xf32>
    %125 = arith.negf %124 : vector<1x128xf32>
    %126 = math.exp %125 : vector<1x128xf32>
    %cst_40 = arith.constant 1.000000e+00 : f32
    %127 = vector.broadcast %cst_40 : f32 to vector<1x128xf32>
    %128 = arith.addf %127, %126 : vector<1x128xf32>
    %129 = arith.divf %127, %128 : vector<1x128xf32>
    %130 = vector.extract_strided_slice %117 {offsets = [0, 256], sizes = [1, 128], strides = [1, 1]} : vector<1x512xf32> to vector<1x128xf32>
    %131 = math.tanh %130 : vector<1x128xf32>
    %132 = vector.extract_strided_slice %117 {offsets = [0, 384], sizes = [1, 128], strides = [1, 1]} : vector<1x512xf32> to vector<1x128xf32>
    %133 = arith.negf %132 : vector<1x128xf32>
    %134 = math.exp %133 : vector<1x128xf32>
    %cst_41 = arith.constant 1.000000e+00 : f32
    %135 = vector.broadcast %cst_41 : f32 to vector<1x128xf32>
    %136 = arith.addf %135, %134 : vector<1x128xf32>
    %137 = arith.divf %135, %136 : vector<1x128xf32>
    %138 = arith.mulf %123, %106 : vector<1x128xf32>
    %139 = arith.mulf %129, %131 : vector<1x128xf32>
    %140 = arith.addf %138, %139 : vector<1x128xf32>
    %141 = math.tanh %140 : vector<1x128xf32>
    %142 = arith.mulf %137, %141 : vector<1x128xf32>
    %143 = arith.index_cast %c3_i32 : i32 to index
    %c0_42 = arith.constant 0 : index
    %144 = vector.load %arg7[%143, %c0_42] : memref<8x128xf32, #tpu.memory_space<vmem>>, vector<1x128xf32>
    tpu.vector_store %arg7[%143, %c0_42], %142 {strides = array<i32>} : memref<8x128xf32, #tpu.memory_space<vmem>>, vector<1x128xf32>,
    %c4_i32 = arith.constant 4 : i32
    %145 = arith.index_cast %c4_i32 : i32 to index
    %146 = memref.load %arg0[%145] : memref<8xi32, #tpu.memory_space<smem>>
    %147 = arith.index_cast %146 : i32 to index
    %c0_43 = arith.constant 0 : index
    %148 = vector.load %arg9[%147, %c0_43] : memref<16x512xf32, #tpu.memory_space<vmem>>, vector<1x512xf32>
    %c0_44 = arith.constant 0 : index
    %c0_45 = arith.constant 0 : index
    %149 = vector.load %arg3[%c0_44, %c0_45] : memref<128x512xf32, #tpu.memory_space<vmem>>, vector<128x512xf32>
    %cst_46 = arith.constant dense<0.000000e+00> : vector<1x512xf32>
    %150 = tpu.matmul %142, %149, %cst_46 {dimension_numbers = #tpu.dot_dimension_numbers<[1], [0], [0], [1], [0, 0, 1, 1], [], []>} : vector<1x128xf32>, vector<128x512xf32>, vector<1x512xf32> -> vector<1x512xf32>
    %151 = arith.addf %148, %150 : vector<1x512xf32>
    %152 = vector.extract_strided_slice %151 {offsets = [0, 0], sizes = [1, 128], strides = [1, 1]} : vector<1x512xf32> to vector<1x128xf32>
    %153 = arith.negf %152 : vector<1x128xf32>
    %154 = math.exp %153 : vector<1x128xf32>
    %cst_47 = arith.constant 1.000000e+00 : f32
    %155 = vector.broadcast %cst_47 : f32 to vector<1x128xf32>
    %156 = arith.addf %155, %154 : vector<1x128xf32>
    %157 = arith.divf %155, %156 : vector<1x128xf32>
    %158 = vector.extract_strided_slice %151 {offsets = [0, 128], sizes = [1, 128], strides = [1, 1]} : vector<1x512xf32> to vector<1x128xf32>
    %159 = arith.negf %158 : vector<1x128xf32>
    %160 = math.exp %159 : vector<1x128xf32>
    %cst_48 = arith.constant 1.000000e+00 : f32
    %161 = vector.broadcast %cst_48 : f32 to vector<1x128xf32>
    %162 = arith.addf %161, %160 : vector<1x128xf32>
    %163 = arith.divf %161, %162 : vector<1x128xf32>
    %164 = vector.extract_strided_slice %151 {offsets = [0, 256], sizes = [1, 128], strides = [1, 1]} : vector<1x512xf32> to vector<1x128xf32>
    %165 = math.tanh %164 : vector<1x128xf32>
    %166 = vector.extract_strided_slice %151 {offsets = [0, 384], sizes = [1, 128], strides = [1, 1]} : vector<1x512xf32> to vector<1x128xf32>
    %167 = arith.negf %166 : vector<1x128xf32>
    %168 = math.exp %167 : vector<1x128xf32>
    %cst_49 = arith.constant 1.000000e+00 : f32
    %169 = vector.broadcast %cst_49 : f32 to vector<1x128xf32>
    %170 = arith.addf %169, %168 : vector<1x128xf32>
    %171 = arith.divf %169, %170 : vector<1x128xf32>
    %172 = arith.mulf %157, %140 : vector<1x128xf32>
    %173 = arith.mulf %163, %165 : vector<1x128xf32>
    %174 = arith.addf %172, %173 : vector<1x128xf32>
    %175 = math.tanh %174 : vector<1x128xf32>
    %176 = arith.mulf %171, %175 : vector<1x128xf32>
    %177 = arith.index_cast %c4_i32 : i32 to index
    %c0_50 = arith.constant 0 : index
    %178 = vector.load %arg7[%177, %c0_50] : memref<8x128xf32, #tpu.memory_space<vmem>>, vector<1x128xf32>
    tpu.vector_store %arg7[%177, %c0_50], %176 {strides = array<i32>} : memref<8x128xf32, #tpu.memory_space<vmem>>, vector<1x128xf32>,
    %c5_i32 = arith.constant 5 : i32
    %179 = arith.index_cast %c5_i32 : i32 to index
    %180 = memref.load %arg0[%179] : memref<8xi32, #tpu.memory_space<smem>>
    %181 = arith.index_cast %180 : i32 to index
    %c0_51 = arith.constant 0 : index
    %182 = vector.load %arg9[%181, %c0_51] : memref<16x512xf32, #tpu.memory_space<vmem>>, vector<1x512xf32>
    %c0_52 = arith.constant 0 : index
    %c0_53 = arith.constant 0 : index
    %183 = vector.load %arg3[%c0_52, %c0_53] : memref<128x512xf32, #tpu.memory_space<vmem>>, vector<128x512xf32>
    %cst_54 = arith.constant dense<0.000000e+00> : vector<1x512xf32>
    %184 = tpu.matmul %176, %183, %cst_54 {dimension_numbers = #tpu.dot_dimension_numbers<[1], [0], [0], [1], [0, 0, 1, 1], [], []>} : vector<1x128xf32>, vector<128x512xf32>, vector<1x512xf32> -> vector<1x512xf32>
    %185 = arith.addf %182, %184 : vector<1x512xf32>
    %186 = vector.extract_strided_slice %185 {offsets = [0, 0], sizes = [1, 128], strides = [1, 1]} : vector<1x512xf32> to vector<1x128xf32>
    %187 = arith.negf %186 : vector<1x128xf32>
    %188 = math.exp %187 : vector<1x128xf32>
    %cst_55 = arith.constant 1.000000e+00 : f32
    %189 = vector.broadcast %cst_55 : f32 to vector<1x128xf32>
    %190 = arith.addf %189, %188 : vector<1x128xf32>
    %191 = arith.divf %189, %190 : vector<1x128xf32>
    %192 = vector.extract_strided_slice %185 {offsets = [0, 128], sizes = [1, 128], strides = [1, 1]} : vector<1x512xf32> to vector<1x128xf32>
    %193 = arith.negf %192 : vector<1x128xf32>
    %194 = math.exp %193 : vector<1x128xf32>
    %cst_56 = arith.constant 1.000000e+00 : f32
    %195 = vector.broadcast %cst_56 : f32 to vector<1x128xf32>
    %196 = arith.addf %195, %194 : vector<1x128xf32>
    %197 = arith.divf %195, %196 : vector<1x128xf32>
    %198 = vector.extract_strided_slice %185 {offsets = [0, 256], sizes = [1, 128], strides = [1, 1]} : vector<1x512xf32> to vector<1x128xf32>
    %199 = math.tanh %198 : vector<1x128xf32>
    %200 = vector.extract_strided_slice %185 {offsets = [0, 384], sizes = [1, 128], strides = [1, 1]} : vector<1x512xf32> to vector<1x128xf32>
    %201 = arith.negf %200 : vector<1x128xf32>
    %202 = math.exp %201 : vector<1x128xf32>
    %cst_57 = arith.constant 1.000000e+00 : f32
    %203 = vector.broadcast %cst_57 : f32 to vector<1x128xf32>
    %204 = arith.addf %203, %202 : vector<1x128xf32>
    %205 = arith.divf %203, %204 : vector<1x128xf32>
    %206 = arith.mulf %191, %174 : vector<1x128xf32>
    %207 = arith.mulf %197, %199 : vector<1x128xf32>
    %208 = arith.addf %206, %207 : vector<1x128xf32>
    %209 = math.tanh %208 : vector<1x128xf32>
    %210 = arith.mulf %205, %209 : vector<1x128xf32>
    %211 = arith.index_cast %c5_i32 : i32 to index
    %c0_58 = arith.constant 0 : index
    %212 = vector.load %arg7[%211, %c0_58] : memref<8x128xf32, #tpu.memory_space<vmem>>, vector<1x128xf32>
    tpu.vector_store %arg7[%211, %c0_58], %210 {strides = array<i32>} : memref<8x128xf32, #tpu.memory_space<vmem>>, vector<1x128xf32>,
    %c6_i32 = arith.constant 6 : i32
    %213 = arith.index_cast %c6_i32 : i32 to index
    %214 = memref.load %arg0[%213] : memref<8xi32, #tpu.memory_space<smem>>
    %215 = arith.index_cast %214 : i32 to index
    %c0_59 = arith.constant 0 : index
    %216 = vector.load %arg9[%215, %c0_59] : memref<16x512xf32, #tpu.memory_space<vmem>>, vector<1x512xf32>
    %c0_60 = arith.constant 0 : index
    %c0_61 = arith.constant 0 : index
    %217 = vector.load %arg3[%c0_60, %c0_61] : memref<128x512xf32, #tpu.memory_space<vmem>>, vector<128x512xf32>
    %cst_62 = arith.constant dense<0.000000e+00> : vector<1x512xf32>
    %218 = tpu.matmul %210, %217, %cst_62 {dimension_numbers = #tpu.dot_dimension_numbers<[1], [0], [0], [1], [0, 0, 1, 1], [], []>} : vector<1x128xf32>, vector<128x512xf32>, vector<1x512xf32> -> vector<1x512xf32>
    %219 = arith.addf %216, %218 : vector<1x512xf32>
    %220 = vector.extract_strided_slice %219 {offsets = [0, 0], sizes = [1, 128], strides = [1, 1]} : vector<1x512xf32> to vector<1x128xf32>
    %221 = arith.negf %220 : vector<1x128xf32>
    %222 = math.exp %221 : vector<1x128xf32>
    %cst_63 = arith.constant 1.000000e+00 : f32
    %223 = vector.broadcast %cst_63 : f32 to vector<1x128xf32>
    %224 = arith.addf %223, %222 : vector<1x128xf32>
    %225 = arith.divf %223, %224 : vector<1x128xf32>
    %226 = vector.extract_strided_slice %219 {offsets = [0, 128], sizes = [1, 128], strides = [1, 1]} : vector<1x512xf32> to vector<1x128xf32>
    %227 = arith.negf %226 : vector<1x128xf32>
    %228 = math.exp %227 : vector<1x128xf32>
    %cst_64 = arith.constant 1.000000e+00 : f32
    %229 = vector.broadcast %cst_64 : f32 to vector<1x128xf32>
    %230 = arith.addf %229, %228 : vector<1x128xf32>
    %231 = arith.divf %229, %230 : vector<1x128xf32>
    %232 = vector.extract_strided_slice %219 {offsets = [0, 256], sizes = [1, 128], strides = [1, 1]} : vector<1x512xf32> to vector<1x128xf32>
    %233 = math.tanh %232 : vector<1x128xf32>
    %234 = vector.extract_strided_slice %219 {offsets = [0, 384], sizes = [1, 128], strides = [1, 1]} : vector<1x512xf32> to vector<1x128xf32>
    %235 = arith.negf %234 : vector<1x128xf32>
    %236 = math.exp %235 : vector<1x128xf32>
    %cst_65 = arith.constant 1.000000e+00 : f32
    %237 = vector.broadcast %cst_65 : f32 to vector<1x128xf32>
    %238 = arith.addf %237, %236 : vector<1x128xf32>
    %239 = arith.divf %237, %238 : vector<1x128xf32>
    %240 = arith.mulf %225, %208 : vector<1x128xf32>
    %241 = arith.mulf %231, %233 : vector<1x128xf32>
    %242 = arith.addf %240, %241 : vector<1x128xf32>
    %243 = math.tanh %242 : vector<1x128xf32>
    %244 = arith.mulf %239, %243 : vector<1x128xf32>
    %245 = arith.index_cast %c6_i32 : i32 to index
    %c0_66 = arith.constant 0 : index
    %246 = vector.load %arg7[%245, %c0_66] : memref<8x128xf32, #tpu.memory_space<vmem>>, vector<1x128xf32>
    tpu.vector_store %arg7[%245, %c0_66], %244 {strides = array<i32>} : memref<8x128xf32, #tpu.memory_space<vmem>>, vector<1x128xf32>,
    %c7_i32 = arith.constant 7 : i32
    %247 = arith.index_cast %c7_i32 : i32 to index
    %248 = memref.load %arg0[%247] : memref<8xi32, #tpu.memory_space<smem>>
    %249 = arith.index_cast %248 : i32 to index
    %c0_67 = arith.constant 0 : index
    %250 = vector.load %arg9[%249, %c0_67] : memref<16x512xf32, #tpu.memory_space<vmem>>, vector<1x512xf32>
    %c0_68 = arith.constant 0 : index
    %c0_69 = arith.constant 0 : index
    %251 = vector.load %arg3[%c0_68, %c0_69] : memref<128x512xf32, #tpu.memory_space<vmem>>, vector<128x512xf32>
    %cst_70 = arith.constant dense<0.000000e+00> : vector<1x512xf32>
    %252 = tpu.matmul %244, %251, %cst_70 {dimension_numbers = #tpu.dot_dimension_numbers<[1], [0], [0], [1], [0, 0, 1, 1], [], []>} : vector<1x128xf32>, vector<128x512xf32>, vector<1x512xf32> -> vector<1x512xf32>
    %253 = arith.addf %250, %252 : vector<1x512xf32>
    %254 = vector.extract_strided_slice %253 {offsets = [0, 0], sizes = [1, 128], strides = [1, 1]} : vector<1x512xf32> to vector<1x128xf32>
    %255 = arith.negf %254 : vector<1x128xf32>
    %256 = math.exp %255 : vector<1x128xf32>
    %cst_71 = arith.constant 1.000000e+00 : f32
    %257 = vector.broadcast %cst_71 : f32 to vector<1x128xf32>
    %258 = arith.addf %257, %256 : vector<1x128xf32>
    %259 = arith.divf %257, %258 : vector<1x128xf32>
    %260 = vector.extract_strided_slice %253 {offsets = [0, 128], sizes = [1, 128], strides = [1, 1]} : vector<1x512xf32> to vector<1x128xf32>
    %261 = arith.negf %260 : vector<1x128xf32>
    %262 = math.exp %261 : vector<1x128xf32>
    %cst_72 = arith.constant 1.000000e+00 : f32
    %263 = vector.broadcast %cst_72 : f32 to vector<1x128xf32>
    %264 = arith.addf %263, %262 : vector<1x128xf32>
    %265 = arith.divf %263, %264 : vector<1x128xf32>
    %266 = vector.extract_strided_slice %253 {offsets = [0, 256], sizes = [1, 128], strides = [1, 1]} : vector<1x512xf32> to vector<1x128xf32>
    %267 = math.tanh %266 : vector<1x128xf32>
    %268 = vector.extract_strided_slice %253 {offsets = [0, 384], sizes = [1, 128], strides = [1, 1]} : vector<1x512xf32> to vector<1x128xf32>
    %269 = arith.negf %268 : vector<1x128xf32>
    %270 = math.exp %269 : vector<1x128xf32>
    %cst_73 = arith.constant 1.000000e+00 : f32
    %271 = vector.broadcast %cst_73 : f32 to vector<1x128xf32>
    %272 = arith.addf %271, %270 : vector<1x128xf32>
    %273 = arith.divf %271, %272 : vector<1x128xf32>
    %274 = arith.mulf %259, %242 : vector<1x128xf32>
    %275 = arith.mulf %265, %267 : vector<1x128xf32>
    %276 = arith.addf %274, %275 : vector<1x128xf32>
    %277 = math.tanh %276 : vector<1x128xf32>
    %278 = arith.mulf %273, %277 : vector<1x128xf32>
    %279 = arith.index_cast %c7_i32 : i32 to index
    %c0_74 = arith.constant 0 : index
    %280 = vector.load %arg7[%279, %c0_74] : memref<8x128xf32, #tpu.memory_space<vmem>>, vector<1x128xf32>
    tpu.vector_store %arg7[%279, %c0_74], %278 {strides = array<i32>} : memref<8x128xf32, #tpu.memory_space<vmem>>, vector<1x128xf32>,
    %c8_i32 = arith.constant 8 : i32
    %c0_75 = arith.constant 0 : index
    %c0_76 = arith.constant 0 : index
    %281 = vector.load %arg8[%c0_75, %c0_76] : memref<1x128xf32, #tpu.memory_space<vmem>>, vector<1x128xf32>
    tpu.vector_store %arg8[%c0_75, %c0_76], %276 {strides = array<i32>} : memref<1x128xf32, #tpu.memory_space<vmem>>, vector<1x128xf32>,
    return
  }
}

</mosaic_0001>

<bundles_post_ra>
// kernel: tpu_custom_call.1
= control target key start
LH: loop header
LB: loop body
LE: loop exit
PB: predicated region body
PF: predicated region fallthrough
CT: control target
= control target key end

     0   :  { %14 = vsyncpa [#allocation6], 0  ;;  %s4177_s0 = inlined_call_operand.hbm [shape: s32[8], index: 0, kind: input, shape index: {}]   ;;  %s4178_s1 = inlined_call_operand.hbm [shape: f32[16,128], index: 1, kind: input, shape index: {}]   ;;  %s4179_s2 = inlined_call_operand.hbm [shape: f32[128,512], index: 2, kind: input, shape index: {}]   ;;  %s4180_s3 = inlined_call_operand.hbm [shape: f32[128,512], index: 3, kind: input, shape index: {}]   ;;  %s4181_s4 = inlined_call_operand.vmem [shape: f32[1,512], index: 4, kind: input, shape index: {}]   ;;  %s4182_s5 = inlined_call_operand.vmem [shape: f32[1,128], index: 5, kind: input, shape index: {}]   ;;  %s4183_s6 = inlined_call_operand.vmem [shape: f32[1,128], index: 6, kind: input, shape index: {}]   ;;  %s4184_s7 = inlined_call_operand.hbm [shape: f32[8,128], index: 7, kind: output, shape index: {0}]   ;;  %s4185_s8 = inlined_call_operand.hbm [shape: f32[1,128], index: 8, kind: output, shape index: {1}]  }
   0x1   :  { %15 = vsyncpa [#allocation4], 0 }
   0x2   :  { %16 = vsyncpa [#allocation9], 0 }
   0x3   :  { %17 = vsyncpa [#allocation5], 0 }
   0x4   :  { %18 = vsyncpa [#allocation13], 0  ;;  %s3515_s27 = smov [#allocation8]   ;;  %s3385_s9 = scalar_lea.hbm %s4179_s2, 8192 }
   0x5   :  { %s44_s28 = sshll.u32 %s3515_s27, 4  ;;  %p3386_p0 = scmp.ne.s32.totalorder %s4179_s2, %s3385_s9  ;;  %s45_s28 = int_to_ptr.vmem [resolvable:$true] %s44_s28 }
   0x6   :  { %p3389_p1 = scmp.lt.u32.totalorder %s3385_s9, %s4179_s2 }
   0x8   :  { %p3391_p2 = pnand %p3389_p1, %p3386_p0 }
   0xa   :  { %3394 = shalt.err (!%p3391_p2)
}
   0xb   :  { %s3395_s14 = scalar_lea.vmem %s45_s28, 8192  ;;  %p3400_p4 = scmp.lt.s32.totalorder %s45_s28, %s45_s28 }
   0xc   :  { %p3396_p3 = scmp.ne.s32.totalorder %s45_s28, %s3395_s14  ;;  %p3401_p5 = scmp.lt.s32.totalorder %s3395_s14, %s3395_s14 }
   0xe   :  { %p3402_p6 = por %p3401_p5, %p3400_p4 }
  0x10   :  { %p3403_p7 = pnand %p3402_p6, %p3396_p3 }
  0x12   :  { %3406 = shalt.err (!%p3403_p7)
}
  0x13   :  { %s3516_s15 = smov 512   ;;  %s3517_s16 = smov 32  }
  0x14   :  { %50 = dma.hbm_to_vmem [thread:$0]  %s4179_s2, 8192, %s45_s28, [#allocation9], %s3516_s15, %s3516_s15, %s3517_s16  }
  0x15   :  { %s3407_s21 = scalar_lea.hbm %s4177_s0, 16 }
  0x16   :  { %p3408_p8 = scmp.ne.s32.totalorder %s4177_s0, %s3407_s21  ;;  %p3411_p9 = scmp.lt.u32.totalorder %s3407_s21, %s4177_s0 }
  0x18   :  { %p3413_p10 = pnand %p3411_p9, %p3408_p8 }
  0x1a   :  { %3416 = shalt.err (!%p3413_p10)
}
  0x1b   :  { %s3518_s26 = smov [#allocation3]   ;;  %s3519_s2 = smov [#allocation7]  }
  0x1c   :  { %26 = dma.hbm_to_smem %s4177_s0, 16, %s3518_s26, [#allocation6]  }
  0x1d   :  { %s32_s28 = sshll.u32 %s3519_s2, 4  ;;  %s3417_s10 = scalar_lea.hbm %s4178_s1, 256  ;;  %s33_s28 = int_to_ptr.vmem [resolvable:$true] %s32_s28 }
  0x1e   :  { %p3418_p11 = scmp.ne.s32.totalorder %s4178_s1, %s3417_s10  ;;  %p3421_p12 = scmp.lt.u32.totalorder %s3417_s10, %s4178_s1 }
  0x20   :  { %p3423_p13 = pnand %p3421_p12, %p3418_p11 }
  0x22   :  { %3426 = shalt.err (!%p3423_p13)
}
  0x23   :  { %s3427_s17 = scalar_lea.vmem %s33_s28, 256  ;;  %p3432_p1 = scmp.lt.s32.totalorder %s33_s28, %s33_s28 }
  0x24   :  { %p3428_p0 = scmp.ne.s32.totalorder %s33_s28, %s3427_s17  ;;  %p3433_p2 = scmp.lt.s32.totalorder %s3427_s17, %s3427_s17 }
  0x26   :  { %p3434_p3 = por %p3433_p2, %p3432_p1 }
  0x28   :  { %p3435_p4 = pnand %p3434_p3, %p3428_p0 }
  0x2a   :  { %3438 = shalt.err (!%p3435_p4)
}
  0x2b   :  { %s3520_s0 = smov 128   ;;  %s3521_s18 = smov 8  }
  0x2c   :  { %38 = dma.hbm_to_vmem [thread:$0]  %s4178_s1, 256, %s33_s28, [#allocation4], %s3520_s0, %s3520_s0, %s3521_s18  }
  0x2d   :  { %s3522_s21 = smov [#allocation10]   ;;  %s3439_s25 = scalar_lea.hbm %s4180_s3, 8192 }
  0x2e   :  { %s56_s22 = sshll.u32 %s3522_s21, 4  ;;  %p3440_p5 = scmp.ne.s32.totalorder %s4180_s3, %s3439_s25  ;;  %s57_s22 = int_to_ptr.vmem [resolvable:$true] %s56_s22 }
  0x2f   :  { %p3443_p6 = scmp.lt.u32.totalorder %s3439_s25, %s4180_s3 }
  0x31   :  { %p3445_p7 = pnand %p3443_p6, %p3440_p5 }
  0x33   :  { %3448 = shalt.err (!%p3445_p7)
}
  0x34   :  { %s3449_s30 = scalar_lea.vmem %s57_s22, 8192  ;;  %p3454_p9 = scmp.lt.s32.totalorder %s57_s22, %s57_s22 }
  0x35   :  { %p3450_p8 = scmp.ne.s32.totalorder %s57_s22, %s3449_s30  ;;  %p3455_p10 = scmp.lt.s32.totalorder %s3449_s30, %s3449_s30 }
  0x37   :  { %p3456_p11 = por %p3455_p10, %p3454_p9 }
  0x39   :  { %p3457_p12 = pnand %p3456_p11, %p3450_p8 }
  0x3b   :  { %3460 = shalt.err (!%p3457_p12)
}
  0x3c   :  { %62 = dma.hbm_to_vmem [thread:$0]  %s4180_s3, 8192, %s57_s22, [#allocation9], %s3516_s15, %s3516_s15, %s3517_s16  }
  0x3d   :  { %3505 = dma.done.wait [#allocation6], 16  }
  0x3e   :  { %3506 = vsyncadd [#allocation6], 4294967280 }
  0x3f   :  { %3507 = dma.done.wait [#allocation4], 256  }
  0x40   :  { %3508 = vsyncadd [#allocation4], 4294967040 }
  0x41   :  { %3509 = dma.done.wait [#allocation9], 16384  }
  0x42   :  { %3510 = vsyncadd [#allocation9], 4294950912 }
  0x43   :  { %81 = sfence }
  0x44   :  { %v85_v0 = vld [vmem:[#allocation8 + $0x8] sm:$0xff]  ;;  %v87_v2 = vld [vmem:[#allocation8 + $0x18] sm:$0xff]  ;;  %v84_v5 = vld [vmem:[#allocation8] sm:$0xff]  ;;  %v3523_v7 = vmov 0.0   ;;  %s2625_s22 = sld [smem:[#allocation3 + $0x2]]  ;;  %s2631_s29 = sld [smem:[#allocation3 + $0x3]] }
  0x45   :  { %v89_v1 = vld [vmem:[#allocation8 + $0x28] sm:$0xff]  ;;  %v91_v4 = vld [vmem:[#allocation8 + $0x38] sm:$0xff]  ;;  %v88_v6 = vld [vmem:[#allocation8 + $0x20] sm:$0xff]  ;;  %234 = vmatprep.mubr.f32.mxu0 %v3523_v7  ;;  %311 = vmatprep.mubr.f32.mxu1 %v3523_v7  ;;  %s2637_s15 = sld [smem:[#allocation3 + $0x4]] }
  0x46   :  { %v2669_v3 = vpack.c.bf16 %v89_v1, %v85_v0  ;;  %v2701_v8 = vpack.c.bf16 %v91_v4, %v87_v2  ;;  %v2671_v9 = vpack.c.bf16 %v88_v6, %v84_v5  ;;  %v86_v10 = vld [vmem:[#allocation8 + $0x10] sm:$0xff]  ;;  %v93_v12 = vld [vmem:[#allocation8 + $0x48] sm:$0xff]  ;;  %v95_v15 = vld [vmem:[#allocation8 + $0x58] sm:$0xff] }
  0x47   :  { %v90_v11 = vld [vmem:[#allocation8 + $0x30] sm:$0xff]  ;;  %v97_v14 = vld [vmem:[#allocation8 + $0x68] sm:$0xff]  ;;  %v99_v16 = vld [vmem:[#allocation8 + $0x78] sm:$0xff] }
  0x48   :  { %2670 = vmatprep.subr.bf16.mxu0 %v2669_v3  ;;  %v2703_v13 = vpack.c.bf16 %v90_v11, %v86_v10  ;;  %2702 = vmatprep.subr.bf16.mxu1 %v2701_v8  ;;  %v2673_v17 = vpack.c.bf16 %v97_v14, %v93_v12  ;;  %v2705_v18 = vpack.c.bf16 %v99_v16, %v95_v15  ;;  %v92_v19 = vld [vmem:[#allocation8 + $0x40] sm:$0xff]  ;;  %v94_v21 = vld [vmem:[#allocation8 + $0x50] sm:$0xff]  ;;  %v101_v24 = vld [vmem:[#allocation8 + $0x88] sm:$0xff] }
  0x49   :  { %2672 = vmatpush1.bf16.msra.mxu0 %v2671_v9  ;;  %v96_v20 = vld [vmem:[#allocation8 + $0x60] sm:$0xff]  ;;  %v98_v23 = vld [vmem:[#allocation8 + $0x70] sm:$0xff]  ;;  %v105_v25 = vld [vmem:[#allocation8 + $0xa8] sm:$0xff] }
  0x4a   :  { %2704 = vmatpush1.bf16.msra.mxu1 %v2703_v13  ;;  %v2675_v22 = vpack.c.bf16 %v96_v20, %v92_v19  ;;  %2674 = vmatprep.subr.bf16.mxu0 %v2673_v17  ;;  %v2707_v26 = vpack.c.bf16 %v98_v23, %v94_v21  ;;  %v2677_v27 = vpack.c.bf16 %v105_v25, %v101_v24  ;;  %v103_v28 = vld [vmem:[#allocation8 + $0x98] sm:$0xff]  ;;  %v100_v30 = vld [vmem:[#allocation8 + $0x80] sm:$0xff]  ;;  %v102_v33 = vld [vmem:[#allocation8 + $0x90] sm:$0xff]  ;;  %s891_s23 = sshra.s32 %s2625_s22, 3  ;;  %s894_s24 = sand.u32 7, %s2625_s22 }
  0x4b   :  { %2706 = vmatprep.subr.bf16.mxu1 %v2705_v18  ;;  %v107_v29 = vld [vmem:[#allocation8 + $0xb8] sm:$0xff]  ;;  %v104_v32 = vld [vmem:[#allocation8 + $0xa0] sm:$0xff]  ;;  %v106_v34 = vld [vmem:[#allocation8 + $0xb0] sm:$0xff]  ;;  %s2663_s25 = sshll.u32 %s891_s23, 5  ;;  %s1169_s2 = sshra.s32 %s2631_s29, 3 }
  0x4c   :  { %v2709_v31 = vpack.c.bf16 %v107_v29, %v103_v28  ;;  %v2679_v35 = vpack.c.bf16 %v104_v32, %v100_v30  ;;  %v109_v36 = vld [vmem:[#allocation8 + $0xc8] sm:$0xff]  ;;  %v111_v38 = vld [vmem:[#allocation8 + $0xd8] sm:$0xff]  ;;  %v2711_v39 = vpack.c.bf16 %v106_v34, %v102_v33  ;;  %v108_v42 = vld [vmem:[#allocation8 + $0xc0] sm:$0xff]  ;;  %s897_s26 = sadd.s32 %s2663_s25, %s894_s24  ;;  %s1172_s30 = sand.u32 7, %s2631_s29 }
  0x4d   :  { %2676 = vmatpush1.bf16.msra.mxu0 %v2675_v22  ;;  %v113_v37 = vld [vmem:[#allocation8 + $0xe8] sm:$0xff]  ;;  %v115_v41 = vld [vmem:[#allocation8 + $0xf8] sm:$0xff]  ;;  %v112_v43 = vld [vmem:[#allocation8 + $0xe0] sm:$0xff]  ;;  %s898_s27 = scalar_lea.vmem [#allocation2], %s897_s26  ;;  %s2664_s1 = sshll.u32 %s1169_s2, 5 }
  0x4e   :  { %2708 = vmatpush1.bf16.msra.mxu1 %v2707_v26  ;;  %2678 = vmatprep.subr.bf16.mxu0 %v2677_v27  ;;  %v2681_v40 = vpack.c.bf16 %v113_v37, %v109_v36  ;;  %v2713_v44 = vpack.c.bf16 %v115_v41, %v111_v38  ;;  %v110_v45 = vld [vmem:[#allocation8 + $0xd0] sm:$0xff]  ;;  %v117_v47 = vld [vmem:[#allocation8 + $0x108] sm:$0xff]  ;;  %v119_v49 = vld [vmem:[#allocation8 + $0x118] sm:$0xff]  ;;  %v2683_v51 = vpack.c.bf16 %v112_v43, %v108_v42  ;;  %s1175_s28 = sadd.s32 %s2664_s1, %s1172_s30  ;;  %s1450_s16 = sand.u32 7, %s2637_s15 }
  0x4f   :  { %2710 = vmatprep.subr.bf16.mxu1 %v2709_v31  ;;  %v114_v46 = vld [vmem:[#allocation8 + $0xf0] sm:$0xff]  ;;  %v121_v48 = vld [vmem:[#allocation8 + $0x128] sm:$0xff]  ;;  %v123_v50 = vld [vmem:[#allocation8 + $0x138] sm:$0xff]  ;;  %s1176_s3 = scalar_lea.vmem [#allocation2], %s1175_s28  ;;  %s2655_s23 = sld [smem:[#allocation3 + $0x7]] }
  0x50   :  { %v2715_v52 = vpack.c.bf16 %v114_v46, %v110_v45  ;;  %v2685_v53 = vpack.c.bf16 %v121_v48, %v117_v47  ;;  %v116_v54 = vld [vmem:[#allocation8 + $0x100] sm:$0xff]  ;;  %v118_v56 = vld [vmem:[#allocation8 + $0x110] sm:$0xff]  ;;  %v2717_v57 = vpack.c.bf16 %v123_v50, %v119_v49  ;;  %v125_v59 = vld [vmem:[#allocation8 + $0x148] sm:$0xff]  ;;  %s3525_s2 = smov [#allocation12]  }
  0x51   :  { %2680 = vmatpush1.bf16.msra.mxu0 %v2679_v35  ;;  %v120_v55 = vld [vmem:[#allocation8 + $0x120] sm:$0xff]  ;;  %v122_v58 = vld [vmem:[#allocation8 + $0x130] sm:$0xff]  ;;  %v129_v60 = vld [vmem:[#allocation8 + $0x168] sm:$0xff]  ;;  %s2575_s30 = sshll.u32 %s3525_s2, 4  ;;  %s2576_s30 = int_to_ptr.vmem [resolvable:$true] %s2575_s30 }
  0x52   :  { %2712 = vmatpush1.bf16.msra.mxu1 %v2711_v39  ;;  %2682 = vmatprep.subr.bf16.mxu0 %v2681_v40  ;;  %v127_v61 = vld [vmem:[#allocation8 + $0x158] sm:$0xff]  ;;  %v2687_v63 = vpack.c.bf16 %v120_v55, %v116_v54  ;;  %v2719_v0 = vpack.c.bf16 %v122_v58, %v118_v56  ;;  %v2689_v1 = vpack.c.bf16 %v129_v60, %v125_v59  ;;  %v124_v2 = vld [vmem:[#allocation8 + $0x140] sm:$0xff]  ;;  %v126_v4 = vld [vmem:[#allocation8 + $0x150] sm:$0xff]  ;;  %s3461_s1 = scalar_lea.vmem %s2576_s30, 16  ;;  %s3465_s28 = scalar_lea.vmem %s2576_s30, 32 }
  0x53   :  { %2714 = vmatprep.subr.bf16.mxu1 %v2713_v44  ;;  %v131_v62 = vld [vmem:[#allocation8 + $0x178] sm:$0xff]  ;;  %v128_v3 = vld [vmem:[#allocation8 + $0x160] sm:$0xff]  ;;  %v130_v6 = vld [vmem:[#allocation8 + $0x170] sm:$0xff]  ;;  %p3462_p13 = scmp.ne.s32.totalorder %s2576_s30, %s3461_s1  ;;  %p3466_p0 = scmp.lt.s32.totalorder %s2576_s30, %s2576_s30 }
  0x54   :  { %v2721_v5 = vpack.c.bf16 %v131_v62, %v127_v61  ;;  %v133_v8 = vld [vmem:[#allocation8 + $0x188] sm:$0xff]  ;;  %v135_v10 = vld [vmem:[#allocation8 + $0x198] sm:$0xff]  ;;  %v2691_v12 = vpack.c.bf16 %v128_v3, %v124_v2  ;;  %v2723_v13 = vpack.c.bf16 %v130_v6, %v126_v4  ;;  %v132_v15 = vld [vmem:[#allocation8 + $0x180] sm:$0xff]  ;;  %p3467_p1 = scmp.lt.s32.totalorder %s3465_s28, %s3461_s1 }
  0x55   :  { %2684 = vmatpush1.bf16.msra.mxu0 %v2683_v51  ;;  %v137_v9 = vld [vmem:[#allocation8 + $0x1a8] sm:$0xff]  ;;  %v139_v11 = vld [vmem:[#allocation8 + $0x1b8] sm:$0xff]  ;;  %v136_v16 = vld [vmem:[#allocation8 + $0x1a0] sm:$0xff]  ;;  %s2281_s24 = sshra.s32 %s2655_s23, 3  ;;  %s2284_s25 = sand.u32 7, %s2655_s23 }
  0x56   :  { %2716 = vmatpush1.bf16.msra.mxu1 %v2715_v52  ;;  %2686 = vmatprep.subr.bf16.mxu0 %v2685_v53  ;;  %v2693_v14 = vpack.c.bf16 %v137_v9, %v133_v8  ;;  %v134_v17 = vld [vmem:[#allocation8 + $0x190] sm:$0xff]  ;;  %v2725_v18 = vpack.c.bf16 %v139_v11, %v135_v10  ;;  %v141_v20 = vld [vmem:[#allocation8 + $0x1c8] sm:$0xff]  ;;  %v143_v22 = vld [vmem:[#allocation8 + $0x1d8] sm:$0xff]  ;;  %v2695_v24 = vpack.c.bf16 %v136_v16, %v132_v15  ;;  %s2668_s26 = sshll.u32 %s2281_s24, 5  ;;  %p3468_p2 = por %p3467_p1, %p3466_p0 }
  0x57   :  { %2718 = vmatprep.subr.bf16.mxu1 %v2717_v57  ;;  %v138_v19 = vld [vmem:[#allocation8 + $0x1b0] sm:$0xff]  ;;  %v145_v21 = vld [vmem:[#allocation8 + $0x1e8] sm:$0xff]  ;;  %v147_v23 = vld [vmem:[#allocation8 + $0x1f8] sm:$0xff] }
  0x58   :  { %v2727_v25 = vpack.c.bf16 %v138_v19, %v134_v17  ;;  %v2697_v26 = vpack.c.bf16 %v145_v21, %v141_v20  ;;  %v140_v27 = vld [vmem:[#allocation8 + $0x1c0] sm:$0xff]  ;;  %v142_v29 = vld [vmem:[#allocation8 + $0x1d0] sm:$0xff]  ;;  %v2729_v30 = vpack.c.bf16 %v147_v23, %v143_v22  ;;  %v345_v32 = vld [vmem:[#allocation10 + $0x8] sm:$0xff]  ;;  %p3469_p3 = pnand %p3468_p2, %p3462_p13 }
  0x59   :  { %2688 = vmatpush1.bf16.msra.mxu0 %v2687_v63  ;;  %v144_v28 = vld [vmem:[#allocation8 + $0x1e0] sm:$0xff]  ;;  %v146_v31 = vld [vmem:[#allocation8 + $0x1f0] sm:$0xff]  ;;  %v349_v33 = vld [vmem:[#allocation10 + $0x28] sm:$0xff] }
  0x5a   :  { %2720 = vmatpush1.bf16.msra.mxu1 %v2719_v0  ;;  %2690 = vmatprep.subr.bf16.mxu0 %v2689_v1  ;;  %v347_v34 = vld [vmem:[#allocation10 + $0x18] sm:$0xff]  ;;  %v2699_v36 = vpack.c.bf16 %v144_v28, %v140_v27  ;;  %v2731_v37 = vpack.c.bf16 %v146_v31, %v142_v29  ;;  %v3628_v38 = vpack.c.bf16 %v349_v33, %v345_v32  ;;  %v344_v39 = vld [vmem:[#allocation10] sm:$0xff]  ;;  %v346_v42 = vld [vmem:[#allocation10 + $0x10] sm:$0xff] }
  0x5b   :  { %2722 = vmatprep.subr.bf16.mxu1 %v2721_v5  ;;  %v351_v35 = vld [vmem:[#allocation10 + $0x38] sm:$0xff]  ;;  %v348_v40 = vld [vmem:[#allocation10 + $0x20] sm:$0xff]  ;;  %v350_v43 = vld [vmem:[#allocation10 + $0x30] sm:$0xff] }
  0x5c   :  { %v3630_v41 = vpack.c.bf16 %v351_v35, %v347_v34  ;;  %v353_v44 = vld [vmem:[#allocation10 + $0x48] sm:$0xff]  ;;  %v82_v46 = vld [vmem:[#allocation7] sm:$0xff]  ;;  %v3632_v47 = vpack.c.bf16 %v348_v40, %v344_v39  ;;  %v355_v48 = vld [vmem:[#allocation10 + $0x58] sm:$0xff]  ;;  %v3635_v50 = vpack.c.bf16 %v350_v43, %v346_v42 }
  0x5d   :  { %2692 = vmatpush1.bf16.msra.mxu0 %v2691_v12  ;;  %v357_v45 = vld [vmem:[#allocation10 + $0x68] sm:$0xff]  ;;  %v359_v49 = vld [vmem:[#allocation10 + $0x78] sm:$0xff]  ;;  %v352_v51 = vld [vmem:[#allocation10 + $0x40] sm:$0xff] }
  0x5e   :  { %2724 = vmatpush1.bf16.msra.mxu1 %v2723_v13  ;;  %2694 = vmatprep.subr.bf16.mxu0 %v2693_v14  ;;  %v356_v52 = vld [vmem:[#allocation10 + $0x60] sm:$0xff]  ;;  %v354_v53 = vld [vmem:[#allocation10 + $0x50] sm:$0xff]  ;;  %v3638_v54 = vpack.c.bf16 %v357_v45, %v353_v44  ;;  %v361_v56 = vld [vmem:[#allocation10 + $0x88] sm:$0xff]  ;;  %v3640_v58 = vpack.c.bf16 %v359_v49, %v355_v48 }
  0x5f   :  { %2726 = vmatprep.subr.bf16.mxu1 %v2725_v18  ;;  %v358_v55 = vld [vmem:[#allocation10 + $0x70] sm:$0xff]  ;;  %v365_v57 = vld [vmem:[#allocation10 + $0xa8] sm:$0xff]  ;;  %v363_v59 = vld [vmem:[#allocation10 + $0x98] sm:$0xff]  ;;  %v3643_v62 = vpack.c.bf16 %v356_v52, %v352_v51 }
  0x60   :  { %v367_v60 = vld [vmem:[#allocation10 + $0xb8] sm:$0xff]  ;;  %v3647_v63 = vpack.c.bf16 %v358_v55, %v354_v53  ;;  %v3649_v0 = vpack.c.bf16 %v365_v57, %v361_v56  ;;  %v360_v1 = vld [vmem:[#allocation10 + $0x80] sm:$0xff]  ;;  %v362_v3 = vld [vmem:[#allocation10 + $0x90] sm:$0xff] }
  0x61   :  { %2696 = vmatpush1.bf16.msra.mxu0 %v2695_v24  ;;  %v83_v61 = vld [vmem:[#allocation7 + $0x8] sm:$0xff]  ;;  %v364_v2 = vld [vmem:[#allocation10 + $0xa0] sm:$0xff]  ;;  %v3653_v4 = vpack.c.bf16 %v367_v60, %v363_v59  ;;  %v366_v5 = vld [vmem:[#allocation10 + $0xb0] sm:$0xff] }
  0x62   :  { %2728 = vmatpush1.bf16.msra.mxu1 %v2727_v25  ;;  %2698 = vmatprep.subr.bf16.mxu0 %v2697_v26  ;;  %v369_v6 = vld [vmem:[#allocation10 + $0xc8] sm:$0xff]  ;;  %v371_v9 = vld [vmem:[#allocation10 + $0xd8] sm:$0xff]  ;;  %v3657_v11 = vpack.c.bf16 %v364_v2, %v360_v1  ;;  %v3661_v12 = vpack.c.bf16 %v366_v5, %v362_v3  ;;  %v368_v14 = vld [vmem:[#allocation10 + $0xc0] sm:$0xff] }
  0x63   :  { %2730 = vmatprep.subr.bf16.mxu1 %v2729_v30  ;;  %v373_v8 = vld [vmem:[#allocation10 + $0xe8] sm:$0xff]  ;;  %v375_v10 = vld [vmem:[#allocation10 + $0xf8] sm:$0xff]  ;;  %v372_v15 = vld [vmem:[#allocation10 + $0xe0] sm:$0xff] }
  0x64   :  { %v3663_v13 = vpack.c.bf16 %v373_v8, %v369_v6  ;;  %v370_v16 = vld [vmem:[#allocation10 + $0xd0] sm:$0xff]  ;;  %v3666_v17 = vpack.c.bf16 %v375_v10, %v371_v9  ;;  %v377_v19 = vld [vmem:[#allocation10 + $0x108] sm:$0xff]  ;;  %v379_v21 = vld [vmem:[#allocation10 + $0x118] sm:$0xff]  ;;  %v3671_v23 = vpack.c.bf16 %v372_v15, %v368_v14 }
  0x65   :  { %2700 = vmatpush1.bf16.msra.mxu0 %v2699_v36  ;;  %v374_v18 = vld [vmem:[#allocation10 + $0xf0] sm:$0xff]  ;;  %v381_v20 = vld [vmem:[#allocation10 + $0x128] sm:$0xff]  ;;  %v383_v22 = vld [vmem:[#allocation10 + $0x138] sm:$0xff] }
  0x66   :  { %2732 = vmatpush1.bf16.msra.mxu1 %v2731_v37  ;;  %2734 = vmatprep.subr.bf16.mxu0 %v3628_v38  ;;  %v3675_v24 = vpack.c.bf16 %v374_v18, %v370_v16  ;;  %v3677_v25 = vpack.c.bf16 %v381_v20, %v377_v19  ;;  %v376_v26 = vld [vmem:[#allocation10 + $0x100] sm:$0xff]  ;;  %v378_v28 = vld [vmem:[#allocation10 + $0x110] sm:$0xff]  ;;  %v3680_v29 = vpack.c.bf16 %v383_v22, %v379_v21  ;;  %v385_v31 = vld [vmem:[#allocation10 + $0x148] sm:$0xff]  ;;  %v150_v21 = vlaneseq }
  0x67   :  { %2766 = vmatprep.subr.bf16.mxu1 %v3630_v41  ;;  %v380_v27 = vld [vmem:[#allocation10 + $0x120] sm:$0xff]  ;;  %v382_v30 = vld [vmem:[#allocation10 + $0x130] sm:$0xff]  ;;  %v389_v32 = vld [vmem:[#allocation10 + $0x168] sm:$0xff] }
  0x68   :  { %235 = vmatmul.mubr.f32.vlgmr.msra.gmra.mrb[0].mxu0 %v82_v46  ;;  %v387_v33 = vld [vmem:[#allocation10 + $0x158] sm:$0xff]  ;;  %v3683_v35 = vpack.c.bf16 %v380_v27, %v376_v26  ;;  %v3687_v36 = vpack.c.bf16 %v382_v30, %v378_v28  ;;  %v3689_v37 = vpack.c.bf16 %v389_v32, %v385_v31  ;;  %v384_v39 = vld [vmem:[#allocation10 + $0x140] sm:$0xff]  ;;  %v386_v42 = vld [vmem:[#allocation10 + $0x150] sm:$0xff]  ;;  %v151_v22 = vshrl.u32 %v150_v21, 7 }
  0x69   :  { %312 = vmatmul.mubr.f32.vlgmr.msra.gmra.mrb[0].mxu1 %v82_v46  ;;  %2736 = vmatpush1.bf16.msra.mxu0 %v3632_v47  ;;  %v391_v34 = vld [vmem:[#allocation10 + $0x178] sm:$0xff]  ;;  %v388_v40 = vld [vmem:[#allocation10 + $0x160] sm:$0xff]  ;;  %v390_v44 = vld [vmem:[#allocation10 + $0x170] sm:$0xff] }
  0x6a   :  { %2768 = vmatpush1.bf16.msra.mxu1 %v3635_v50  ;;  %240 = vmatprep.mubr.f32.mxu0 %v3523_v7  ;;  %v3692_v43 = vpack.c.bf16 %v391_v34, %v387_v33  ;;  %v393_v45 = vld [vmem:[#allocation10 + $0x188] sm:$0xff]  ;;  %v395_v48 = vld [vmem:[#allocation10 + $0x198] sm:$0xff]  ;;  %v3695_v51 = vpack.c.bf16 %v388_v40, %v384_v39  ;;  %v3699_v52 = vpack.c.bf16 %v390_v44, %v386_v42  ;;  %v392_v55 = vld [vmem:[#allocation10 + $0x180] sm:$0xff]  ;;  %v152_v26 = vsub.s32 0, %v151_v22 }
  0x6b   :  { %317 = vmatprep.mubr.f32.mxu1 %v3523_v7  ;;  %2738 = vmatprep.subr.bf16.mxu0 %v3638_v54  ;;  %v397_v46 = vld [vmem:[#allocation10 + $0x1a8] sm:$0xff]  ;;  %v399_v49 = vld [vmem:[#allocation10 + $0x1b8] sm:$0xff]  ;;  %v396_v56 = vld [vmem:[#allocation10 + $0x1a0] sm:$0xff]  ;;  %v160_v28 = vsub.s32 2, %v151_v22  ;;  %v156_v30 = vsub.s32 1, %v151_v22  ;;  %v164_v31 = vsub.s32 3, %v151_v22 }
  0x6c   :  { %241 = vmatmul.mubr.f32.gmra.mrb[2].mxu0 %v83_v61  ;;  %2770 = vmatprep.subr.bf16.mxu1 %v3640_v58  ;;  %v3701_v53 = vpack.c.bf16 %v397_v46, %v393_v45  ;;  %v394_v57 = vld [vmem:[#allocation10 + $0x190] sm:$0xff]  ;;  %v3704_v59 = vpack.c.bf16 %v399_v49, %v395_v48  ;;  %v405_v1 = vld [vmem:[#allocation10 + $0x1e8] sm:$0xff]  ;;  %v403_v2 = vld [vmem:[#allocation10 + $0x1d8] sm:$0xff]  ;;  %v3707_v5 = vpack.c.bf16 %v396_v56, %v392_v55 }
  0x6d   :  { %318 = vmatmul.mubr.f32.gmra.mrb[2].mxu1 %v83_v61  ;;  %2740 = vmatpush1.bf16.msra.mxu0 %v3643_v62  ;;  %v398_v60 = vld [vmem:[#allocation10 + $0x1b0] sm:$0xff]  ;;  %v401_v61 = vld [vmem:[#allocation10 + $0x1c8] sm:$0xff]  ;;  %v407_v3 = vld [vmem:[#allocation10 + $0x1f8] sm:$0xff] }
  0x6e   :  { %2772 = vmatpush1.bf16.msra.mxu1 %v3647_v63  ;;  %2742 = vmatprep.subr.bf16.mxu0 %v3649_v0  ;;  %v3711_v6 = vpack.c.bf16 %v398_v60, %v394_v57  ;;  %v3713_v8 = vpack.c.bf16 %v405_v1, %v401_v61  ;;  %v400_v9 = vld [vmem:[#allocation10 + $0x1c0] sm:$0xff]  ;;  %v3716_v14 = vpack.c.bf16 %v407_v3, %v403_v2  ;;  %v402_v15 = vld [vmem:[#allocation10 + $0x1d0] sm:$0xff]  ;;  %v332_v20 = vld [vmem:[%s4182_s5] sm:$0x1]  ;;  %v3524_v3 = vmov 1966171168  }
  0x6f   :  { %2774 = vmatprep.subr.bf16.mxu1 %v3653_v4  ;;  %472 = vmatprep.mubr.f32.mxu0 %v3523_v7  ;;  %v404_v10 = vld [vmem:[#allocation10 + $0x1e0] sm:$0xff]  ;;  %v406_v16 = vld [vmem:[#allocation10 + $0x1f0] sm:$0xff]  ;;  %v148_v27 = vld [vmem:[%s4181_s4] sm:$0xf]  ;;  %s334_s4 = sld [smem:[#allocation3]]  ;;  %s1447_s5 = sshra.s32 %s2637_s15, 3 }
  0x70   :  { %543 = vmatprep.mubr.f32.mxu1 %v3523_v7  ;;  %v3719_v18 = vpack.c.bf16 %v404_v10, %v400_v9  ;;  %v3723_v19 = vpack.c.bf16 %v406_v16, %v402_v15  ;;  %v153_v32 = vrot.slane %v148_v27, %v152_v26  ;;  %v161_v33 = vrot.slane %v148_v27, %v160_v28 }
  0x71   :  { %2744 = vmatpush1.bf16.msra.mxu0 %v3657_v11  ;;  %v157_v34 = vrot.slane %v148_v27, %v156_v30  ;;  %v165_v39 = vrot.slane %v148_v27, %v164_v31  ;;  %v557_v9 = vunpack.c.l.s4 %v3524_v3 }
  0x72   :  { %2776 = vmatpush1.bf16.msra.mxu1 %v3661_v12  ;;  %2746 = vmatprep.subr.bf16.mxu0 %v3663_v13 }
  0x73   :  { %2778 = vmatprep.subr.bf16.mxu1 %v3666_v17  ;;  %v558_v10 = vunpack.c.0.s8 %v557_v9 }
  0x75   :  { %2748 = vmatpush1.bf16.msra.mxu0 %v3671_v23  ;;  %s335_s9 = sshra.s32 %s334_s4, 3  ;;  %v3770_v15 = vsub.s32 %v558_v10, %v151_v22  ;;  %s338_s10 = sand.u32 7, %s334_s4 }
  0x76   :  { %2780 = vmatpush1.bf16.msra.mxu1 %v3675_v24  ;;  %2750 = vmatprep.subr.bf16.mxu0 %v3677_v25  ;;  %s2661_s11 = sshll.u32 %s335_s9, 5  ;;  %s2665_s4 = sshll.u32 %s1447_s5, 5 }
  0x77   :  { %2782 = vmatprep.subr.bf16.mxu1 %v3680_v29  ;;  %s341_s12 = sadd.s32 %s2661_s11, %s338_s10  ;;  %s1453_s9 = sadd.s32 %s2665_s4, %s1450_s16 }
  0x78   :  { %s342_s13 = scalar_lea.vmem [#allocation2], %s341_s12  ;;  %s1454_s10 = scalar_lea.vmem [#allocation2], %s1453_s9 }
  0x79   :  { %2752 = vmatpush1.bf16.msra.mxu0 %v3683_v35  ;;  %s2643_s11 = sld [smem:[#allocation3 + $0x5]] }
  0x7a   :  { %2784 = vmatpush1.bf16.msra.mxu1 %v3687_v36  ;;  %2754 = vmatprep.subr.bf16.mxu0 %v3689_v37 }
  0x7b   :  { %2786 = vmatprep.subr.bf16.mxu1 %v3692_v43 }
  0x7d   :  { %2756 = vmatpush1.bf16.msra.mxu0 %v3695_v51 }
  0x7e   :  { %2788 = vmatpush1.bf16.msra.mxu1 %v3699_v52  ;;  %2758 = vmatprep.subr.bf16.mxu0 %v3701_v53 }
  0x7f   :  { %2790 = vmatprep.subr.bf16.mxu1 %v3704_v59  ;;  %s1725_s12 = sshra.s32 %s2643_s11, 3 }
  0x80   :  { %s2666_s14 = sshll.u32 %s1725_s12, 5 }
  0x81   :  { %2760 = vmatpush1.bf16.msra.mxu0 %v3707_v5 }
  0x82   :  { %2792 = vmatpush1.bf16.msra.mxu1 %v3711_v6  ;;  %2762 = vmatprep.subr.bf16.mxu0 %v3713_v8 }
  0x83   :  { %2794 = vmatprep.subr.bf16.mxu1 %v3716_v14 }
  0x85   :  { %2764 = vmatpush1.bf16.msra.mxu0 %v3719_v18 }
  0x86   :  { %2796 = vmatpush1.bf16.msra.mxu1 %v3723_v19  ;;  %2798 = vmatprep.subr.bf16.mxu0 %v3628_v38 }
  0x87   :  { %2830 = vmatprep.subr.bf16.mxu1 %v3630_v41 }
  0x88   :  { %473 = vmatmul.mubr.f32.vlgmr.msra.gmra.mrb[4].mxu0 %v332_v20 }
  0x89   :  { %544 = vmatmul.mubr.f32.vlgmr.msra.gmra.mrb[4].mxu1 %v332_v20  ;;  %2800 = vmatpush1.bf16.msra.mxu0 %v3632_v47 }
  0x8a   :  { %2832 = vmatpush1.bf16.msra.mxu1 %v3635_v50  ;;  %2802 = vmatprep.subr.bf16.mxu0 %v3638_v54 }
  0x8b   :  { %2834 = vmatprep.subr.bf16.mxu1 %v3640_v58  ;;  %750 = vmatprep.mubr.f32.mxu0 %v3523_v7 }
  0x8c   :  { %821 = vmatprep.mubr.f32.mxu1 %v3523_v7 }
  0x8d   :  { %2804 = vmatpush1.bf16.msra.mxu0 %v3643_v62 }
  0x8e   :  { %2836 = vmatpush1.bf16.msra.mxu1 %v3647_v63  ;;  %2806 = vmatprep.subr.bf16.mxu0 %v3649_v0 }
  0x8f   :  { %2838 = vmatprep.subr.bf16.mxu1 %v3653_v4 }
  0x91   :  { %2808 = vmatpush1.bf16.msra.mxu0 %v3657_v11 }
  0x92   :  { %2840 = vmatpush1.bf16.msra.mxu1 %v3661_v12  ;;  %2810 = vmatprep.subr.bf16.mxu0 %v3663_v13 }
  0x93   :  { %2842 = vmatprep.subr.bf16.mxu1 %v3666_v17 }
  0x95   :  { %2812 = vmatpush1.bf16.msra.mxu0 %v3671_v23 }
  0x96   :  { %2844 = vmatpush1.bf16.msra.mxu1 %v3675_v24  ;;  %2814 = vmatprep.subr.bf16.mxu0 %v3677_v25 }
  0x97   :  { %2846 = vmatprep.subr.bf16.mxu1 %v3680_v29 }
  0x99   :  { %2816 = vmatpush1.bf16.msra.mxu0 %v3683_v35 }
  0x9a   :  { %2848 = vmatpush1.bf16.msra.mxu1 %v3687_v36  ;;  %2818 = vmatprep.subr.bf16.mxu0 %v3689_v37 }
  0x9b   :  { %2850 = vmatprep.subr.bf16.mxu1 %v3692_v43 }
  0x9d   :  { %2820 = vmatpush1.bf16.msra.mxu0 %v3695_v51 }
  0x9e   :  { %2852 = vmatpush1.bf16.msra.mxu1 %v3699_v52  ;;  %2822 = vmatprep.subr.bf16.mxu0 %v3701_v53 }
  0x9f   :  { %2854 = vmatprep.subr.bf16.mxu1 %v3704_v59 }
  0xa1   :  { %2824 = vmatpush1.bf16.msra.mxu0 %v3707_v5 }
  0xa2   :  { %2856 = vmatpush1.bf16.msra.mxu1 %v3711_v6  ;;  %2826 = vmatprep.subr.bf16.mxu0 %v3713_v8 }
  0xa3   :  { %2858 = vmatprep.subr.bf16.mxu1 %v3716_v14 }
  0xa5   :  { %2828 = vmatpush1.bf16.msra.mxu0 %v3719_v18 }
  0xa6   :  { %2860 = vmatpush1.bf16.msra.mxu1 %v3723_v19  ;;  %2862 = vmatprep.subr.bf16.mxu0 %v3628_v38 }
  0xa7   :  { %2894 = vmatprep.subr.bf16.mxu1 %v3630_v41 }
 0x13b   :  { %v236_v40 = vpop.f32.mrb[0].mxu0 }
 0x13c   :  { %v237_v42 = vadd.f32 %v236_v40, %v153_v32  ;;  %v313_v44 = vpop.f32.mrb[0].mxu1  ;;  %v238_v38 = vpop.f32.mrb[1].mxu0 }
 0x13d   :  { %v314_v45 = vadd.f32 %v313_v44, %v161_v33  ;;  %v239_v41 = vadd.f32 %v238_v38, %v157_v34  ;;  %v315_v46 = vpop.f32.mrb[1].mxu1 }
 0x13e   :  { %324 = vst [vmem:[#allocation2] sm:$0xff] %v237_v42  ;;  %v316_v48 = vadd.f32 %v315_v46, %v165_v39 }
 0x13f   :  { %326 = vst [vmem:[#allocation2 + $0x10] sm:$0xff] %v314_v45  ;;  %325 = vst [vmem:[#allocation2 + $0x8] sm:$0xff] %v239_v41  ;;  %v242_v49 = vpop.f32.mrb[2].mxu0 }
 0x140   :  { %327 = vst [vmem:[#allocation2 + $0x18] sm:$0xff] %v316_v48  ;;  %v243_v55 = vadd.f32 %v242_v49, %v153_v32  ;;  %v319_v56 = vpop.f32.mrb[2].mxu1  ;;  %v244_v57 = vpop.f32.mrb[3].mxu0 }
 0x141   :  { %v320_v60 = vadd.f32 %v319_v56, %v161_v33  ;;  %v245_v61 = vadd.f32 %v244_v57, %v157_v34  ;;  %v321_v1 = vpop.f32.mrb[3].mxu1  ;;  %v333_v57 = vld [vmem:[%s4183_s6] sm:$0x1]  ;;  %s2619_s6 = sld [smem:[#allocation3 + $0x1]] }
 0x142   :  { %328 = vst [vmem:[#allocation2 + $0x20] sm:$0xff] %v243_v55  ;;  %v322_v2 = vadd.f32 %v321_v1, %v165_v39 }
 0x143   :  { %330 = vst [vmem:[#allocation2 + $0x30] sm:$0xff] %v320_v60  ;;  %329 = vst [vmem:[#allocation2 + $0x28] sm:$0xff] %v245_v61 }
 0x144   :  { %331 = vst [vmem:[#allocation2 + $0x38] sm:$0xff] %v322_v2 }
 0x147   :  { %s613_s0 = sshra.s32 %s2619_s6, 3  ;;  %s616_s18 = sand.u32 7, %s2619_s6 }
 0x148   :  { %s2662_s19 = sshll.u32 %s613_s0, 5  ;;  %s2649_s0 = sld [smem:[#allocation3 + $0x6]] }
 0x149   :  { %s619_s20 = sadd.s32 %s2662_s19, %s616_s18 }
 0x14a   :  { %s620_s21 = scalar_lea.vmem [#allocation2], %s619_s20 }
 0x14b   :  { %v343_v34 = vld [vmem:[%s342_s13] ss:$8 sm:$0xf]  ;;  %s1728_s13 = sand.u32 7, %s2643_s11 }
 0x14c   :  { %s1731_s17 = sadd.s32 %s2666_s14, %s1728_s13 }
 0x14d   :  { %s1732_s6 = scalar_lea.vmem [#allocation2], %s1731_s17 }
 0x14e   :  { %s2003_s18 = sshra.s32 %s2649_s0, 3  ;;  %s2006_s19 = sand.u32 7, %s2649_s0 }
 0x14f   :  { %s2667_s20 = sshll.u32 %s2003_s18, 5 }
 0x15b   :  { %v474_v16 = vpop.f32.mrb[4].mxu0 }
 0x15c   :  { %v545_v20 = vpop.f32.mrb[4].mxu1  ;;  %v476_v21 = vpop.f32.mrb[5].mxu0 }
 0x15d   :  { %v554_v26 = vcombine.low %v474_v16, %v476_v21  ;;  %v547_v27 = vpop.f32.mrb[5].mxu1 }
 0x15e   :  { %v555_v28 = vcombine.low %v545_v20, %v547_v27 }
 0x15f   :  { %v562_v30 = vrot.slane %v554_v26, %v3770_v15 }
 0x160   :  { %v569_v31 = vrot.slane %v555_v28, %v3770_v15  ;;  %v1179_v28 = vld [vmem:[#allocation10 + $0x8] sm:$0xff] }
 0x162   :  { %v570_v32 = vcombine.low %v562_v30, %v569_v31  ;;  %v1183_v30 = vld [vmem:[#allocation10 + $0x28] sm:$0xff]  ;;  %v1181_v31 = vld [vmem:[#allocation10 + $0x18] sm:$0xff] }
 0x164   :  { %v577_v33 = vrot.slane %v570_v32, %v3770_v15  ;;  %v3822_v32 = vpack.c.bf16 %v1183_v30, %v1179_v28  ;;  %v1225_v28 = vld [vmem:[#allocation10 + $0x178] sm:$0xff] }
 0x166   :  { %v579_v22 = vadd.f32 %v577_v33, %v343_v34  ;;  %v1185_v33 = vld [vmem:[#allocation10 + $0x38] sm:$0xff]  ;;  %v1178_v34 = vld [vmem:[#allocation10] sm:$0xff] }
 0x168   :  { %v2616_v39 = vmul.f32 -1.442695, %v579_v22  ;;  %v587_v40 = vrot.slane %v579_v22, 1  ;;  %v598_v44 = vrot.slane %v579_v22, 3  ;;  %v595_v41 = vrot.slane %v579_v22, 2  ;;  %v1182_v22 = vld [vmem:[#allocation10 + $0x20] sm:$0xff] }
 0x16a   :  { %3257 = vpow2.f32 %v2616_v39  ;;  %v2617_v42 = vmul.f32 -1.442695, %v587_v40  ;;  %v2618_v38 = vmul.f32 -1.442695, %v598_v44  ;;  %v3824_v39 = vpack.c.bf16 %v1185_v33, %v1181_v31  ;;  %v1184_v44 = vld [vmem:[#allocation10 + $0x30] sm:$0xff] }
 0x16b   :  { %v3826_v40 = vpack.c.bf16 %v1182_v22, %v1178_v34  ;;  %v1218_v34 = vld [vmem:[#allocation10 + $0x140] sm:$0xff] }
 0x16c   :  { %3259 = vpow2.f32 %v2617_v42  ;;  %v1180_v42 = vld [vmem:[#allocation10 + $0x10] sm:$0xff]  ;;  %v1222_v22 = vld [vmem:[#allocation10 + $0x160] sm:$0xff] }
 0x16d   :  { %3261 = vpow2.f32 %v2618_v38  ;;  %v3829_v38 = vpack.c.bf16 %v1184_v44, %v1180_v42  ;;  %v1220_v42 = vld [vmem:[#allocation10 + $0x150] sm:$0xff] }
 0x174   :  { %v3258_v45 = vpop.eup %3257 }
 0x175   :  { %v583_v46 = vadd.f32 1.0, %v3258_v45  ;;  %v1187_v45 = vld [vmem:[#allocation10 + $0x48] sm:$0xff] }
 0x176   :  { %v3260_v48 = vpop.eup %3259 }
 0x177   :  { %3263 = vrcp.f32 %v583_v46  ;;  %v592_v49 = vadd.f32 1.0, %v3260_v48  ;;  %v3262_v55 = vpop.eup %3261  ;;  %v1189_v46 = vld [vmem:[#allocation10 + $0x58] sm:$0xff] }
 0x178   :  { %3265 = vtanh.f32 %v595_v41  ;;  %v603_v1 = vadd.f32 1.0, %v3262_v55  ;;  %v1191_v41 = vld [vmem:[#allocation10 + $0x68] sm:$0xff]  ;;  %v1186_v55 = vld [vmem:[#allocation10 + $0x40] sm:$0xff] }
 0x179   :  { %3267 = vrcp.f32 %v592_v49  ;;  %v3834_v48 = vpack.c.bf16 %v1191_v41, %v1187_v45  ;;  %v1193_v49 = vld [vmem:[#allocation10 + $0x78] sm:$0xff]  ;;  %v1224_v45 = vld [vmem:[#allocation10 + $0x170] sm:$0xff]  ;;  %v1227_v41 = vld [vmem:[#allocation10 + $0x188] sm:$0xff] }
 0x17a   :  { %3269 = vrcp.f32 %v603_v1  ;;  %v1192_v1 = vld [vmem:[#allocation10 + $0x70] sm:$0xff] }
 0x181   :  { %v3264_v56 = vpop.eup %3263 }
 0x182   :  { %v3266_v60 = vpop.eup %3265  ;;  %v606_v2 = vmul.f32 %v3264_v56, %v333_v57  ;;  %v1190_v56 = vld [vmem:[#allocation10 + $0x60] sm:$0xff]  ;;  %v3836_v57 = vpack.c.bf16 %v1193_v49, %v1189_v46  ;;  %v1231_v46 = vld [vmem:[#allocation10 + $0x1a8] sm:$0xff]  ;;  %v1229_v49 = vld [vmem:[#allocation10 + $0x198] sm:$0xff] }
 0x183   :  { %v3268_v61 = vpop.eup %3267 }
 0x184   :  { %v607_v3 = vmul.f32 %v3268_v61, %v3266_v60  ;;  %v3270_v10 = vpop.eup %3269  ;;  %v3838_v60 = vpack.c.bf16 %v1190_v56, %v1186_v55  ;;  %v1188_v61 = vld [vmem:[#allocation10 + $0x50] sm:$0xff]  ;;  %v1233_v55 = vld [vmem:[#allocation10 + $0x1b8] sm:$0xff]  ;;  %v3885_v56 = vpack.c.bf16 %v1222_v22, %v1218_v34 }
 0x185   :  { %v899_v22 = vld [vmem:[%s898_s27] ss:$8 sm:$0xf]  ;;  %s2287_s27 = sadd.s32 %s2668_s26, %s2284_s25 }
 0x186   :  { %v3778_v9 = vadd.f32 %v607_v3, %v606_v2  ;;  %v1195_v2 = vld [vmem:[#allocation10 + $0x88] sm:$0xff]  ;;  %v3841_v3 = vpack.c.bf16 %v1192_v1, %v1188_v61  ;;  %v3889_v61 = vpack.c.bf16 %v1224_v45, %v1220_v42  ;;  %v3891_v1 = vpack.c.bf16 %v1231_v46, %v1227_v41  ;;  %s2288_s29 = scalar_lea.vmem [#allocation2], %s2287_s27 }
 0x188   :  { %3271 = vtanh.f32 %v3778_v9 }
 0x192   :  { %v3272_v16 = vpop.eup %3271 }
 0x193   :  { %v610_v20 = vmul.f32 %v3272_v16, %v3270_v10  ;;  %v1197_v10 = vld [vmem:[#allocation10 + $0x98] sm:$0xff] }
 0x194   :  { %v1201_v16 = vld [vmem:[#allocation10 + $0xb8] sm:$0xff] }
 0x195   :  { %611 = vst [vmem:[#allocation11] sm:$0x1] %v610_v20  ;;  %751 = vmatmul.mubr.f32.vlgmr.msra.gmra.mrb[6].mxu0 %v610_v20  ;;  %822 = vmatmul.mubr.f32.vlgmr.msra.gmra.mrb[6].mxu1 %v610_v20 }
 0x196   :  { %2864 = vmatpush1.bf16.msra.mxu0 %v3632_v47  ;;  %2896 = vmatpush1.bf16.msra.mxu1 %v3635_v50 }
 0x197   :  { %2866 = vmatprep.subr.bf16.mxu0 %v3638_v54  ;;  %2898 = vmatprep.subr.bf16.mxu1 %v3640_v58 }
 0x198   :  { %1028 = vmatprep.mubr.f32.mxu0 %v3523_v7  ;;  %1099 = vmatprep.mubr.f32.mxu1 %v3523_v7 }
 0x19a   :  { %2868 = vmatpush1.bf16.msra.mxu0 %v3643_v62  ;;  %2900 = vmatpush1.bf16.msra.mxu1 %v3647_v63 }
 0x19b   :  { %2870 = vmatprep.subr.bf16.mxu0 %v3649_v0  ;;  %2902 = vmatprep.subr.bf16.mxu1 %v3653_v4 }
 0x19e   :  { %2872 = vmatpush1.bf16.msra.mxu0 %v3657_v11  ;;  %2904 = vmatpush1.bf16.msra.mxu1 %v3661_v12 }
 0x19f   :  { %2874 = vmatprep.subr.bf16.mxu0 %v3663_v13  ;;  %2906 = vmatprep.subr.bf16.mxu1 %v3666_v17  ;;  %v621_v13 = vld [vmem:[%s620_s21] ss:$8 sm:$0xf]  ;;  %s2009_s21 = sadd.s32 %s2667_s20, %s2006_s19 }
 0x1a0   :  { %s2010_s22 = scalar_lea.vmem [#allocation2], %s2009_s21 }
 0x1a2   :  { %2876 = vmatpush1.bf16.msra.mxu0 %v3671_v23  ;;  %2908 = vmatpush1.bf16.msra.mxu1 %v3675_v24 }
 0x1a3   :  { %2878 = vmatprep.subr.bf16.mxu0 %v3677_v25  ;;  %2910 = vmatprep.subr.bf16.mxu1 %v3680_v29 }
 0x1a6   :  { %2880 = vmatpush1.bf16.msra.mxu0 %v3683_v35  ;;  %2912 = vmatpush1.bf16.msra.mxu1 %v3687_v36 }
 0x1a7   :  { %2882 = vmatprep.subr.bf16.mxu0 %v3689_v37  ;;  %2914 = vmatprep.subr.bf16.mxu1 %v3692_v43 }
 0x1aa   :  { %2884 = vmatpush1.bf16.msra.mxu0 %v3695_v51  ;;  %2916 = vmatpush1.bf16.msra.mxu1 %v3699_v52 }
 0x1ab   :  { %2886 = vmatprep.subr.bf16.mxu0 %v3701_v53  ;;  %2918 = vmatprep.subr.bf16.mxu1 %v3704_v59 }
 0x1ae   :  { %2888 = vmatpush1.bf16.msra.mxu0 %v3707_v5  ;;  %2920 = vmatpush1.bf16.msra.mxu1 %v3711_v6 }
 0x1af   :  { %2890 = vmatprep.subr.bf16.mxu0 %v3713_v8  ;;  %2922 = vmatprep.subr.bf16.mxu1 %v3716_v14 }
 0x1b2   :  { %2892 = vmatpush1.bf16.msra.mxu0 %v3719_v18  ;;  %2924 = vmatpush1.bf16.msra.mxu1 %v3723_v19 }
 0x1b3   :  { %2926 = vmatprep.subr.bf16.mxu0 %v3822_v32  ;;  %2958 = vmatprep.subr.bf16.mxu1 %v3824_v39 }
 0x268   :  { %v752_v47 = vpop.f32.mrb[6].mxu0  ;;  %v823_v50 = vpop.f32.mrb[6].mxu1 }
 0x269   :  { %v754_v54 = vpop.f32.mrb[7].mxu0  ;;  %v825_v58 = vpop.f32.mrb[7].mxu1 }
 0x26a   :  { %v832_v62 = vcombine.low %v752_v47, %v754_v54  ;;  %v833_v63 = vcombine.low %v823_v50, %v825_v58  ;;  %v3847_v47 = vpack.c.bf16 %v1201_v16, %v1197_v10  ;;  %v1194_v50 = vld [vmem:[#allocation10 + $0x80] sm:$0xff]  ;;  %v1196_v58 = vld [vmem:[#allocation10 + $0x90] sm:$0xff]  ;;  %v3894_v16 = vpack.c.bf16 %v1233_v55, %v1229_v49 }
 0x26b   :  { %v1198_v54 = vld [vmem:[#allocation10 + $0xa0] sm:$0xff]  ;;  %v1228_v10 = vld [vmem:[#allocation10 + $0x190] sm:$0xff] }
 0x26c   :  { %v840_v0 = vrot.slane %v832_v62, %v3770_v15  ;;  %v847_v4 = vrot.slane %v833_v63, %v3770_v15  ;;  %v3850_v62 = vpack.c.bf16 %v1198_v54, %v1194_v50  ;;  %v1200_v63 = vld [vmem:[#allocation10 + $0xb0] sm:$0xff]  ;;  %v1235_v54 = vld [vmem:[#allocation10 + $0x1c8] sm:$0xff] }
 0x26d   :  { %v1232_v50 = vld [vmem:[#allocation10 + $0x1b0] sm:$0xff] }
 0x26e   :  { %v848_v11 = vcombine.low %v840_v0, %v847_v4  ;;  %v1203_v0 = vld [vmem:[#allocation10 + $0xc8] sm:$0xff] }
 0x26f   :  { %v1207_v4 = vld [vmem:[#allocation10 + $0xe8] sm:$0xff] }
 0x270   :  { %v855_v12 = vrot.slane %v848_v11, %v3770_v15  ;;  %v3854_v11 = vpack.c.bf16 %v1200_v63, %v1196_v58  ;;  %v1239_v58 = vld [vmem:[#allocation10 + $0x1e8] sm:$0xff]  ;;  %v1237_v63 = vld [vmem:[#allocation10 + $0x1d8] sm:$0xff] }
 0x272   :  { %v857_v17 = vadd.f32 %v855_v12, %v621_v13  ;;  %v3856_v12 = vpack.c.bf16 %v1207_v4, %v1203_v0  ;;  %v1205_v13 = vld [vmem:[#allocation10 + $0xd8] sm:$0xff] }
 0x273   :  { %v1241_v0 = vld [vmem:[#allocation10 + $0x1f8] sm:$0xff] }
 0x274   :  { %v2622_v23 = vmul.f32 -1.442695, %v857_v17  ;;  %v865_v24 = vrot.slane %v857_v17, 1  ;;  %v876_v29 = vrot.slane %v857_v17, 3  ;;  %v873_v37 = vrot.slane %v857_v17, 2  ;;  %v1209_v17 = vld [vmem:[#allocation10 + $0xf8] sm:$0xff] }
 0x276   :  { %3273 = vpow2.f32 %v2622_v23  ;;  %v2623_v25 = vmul.f32 -1.442695, %v865_v24  ;;  %v2624_v35 = vmul.f32 -1.442695, %v876_v29  ;;  %v1202_v23 = vld [vmem:[#allocation10 + $0xc0] sm:$0xff]  ;;  %v3858_v24 = vpack.c.bf16 %v1209_v17, %v1205_v13  ;;  %v1204_v29 = vld [vmem:[#allocation10 + $0xd0] sm:$0xff] }
 0x277   :  { %v3901_v13 = vpack.c.bf16 %v1232_v50, %v1228_v10  ;;  %v3903_v17 = vpack.c.bf16 %v1239_v58, %v1235_v54 }
 0x278   :  { %3275 = vpow2.f32 %v2623_v25  ;;  %v1206_v25 = vld [vmem:[#allocation10 + $0xe0] sm:$0xff] }
 0x279   :  { %3277 = vpow2.f32 %v2624_v35  ;;  %v1208_v35 = vld [vmem:[#allocation10 + $0xf0] sm:$0xff] }
 0x280   :  { %v3274_v36 = vpop.eup %3273 }
 0x281   :  { %v861_v43 = vadd.f32 1.0, %v3274_v36  ;;  %v3861_v36 = vpack.c.bf16 %v1206_v25, %v1202_v23  ;;  %v1234_v23 = vld [vmem:[#allocation10 + $0x1c0] sm:$0xff] }
 0x282   :  { %v3276_v51 = vpop.eup %3275  ;;  %v1238_v25 = vld [vmem:[#allocation10 + $0x1e0] sm:$0xff] }
 0x283   :  { %3279 = vrcp.f32 %v861_v43  ;;  %v870_v52 = vadd.f32 1.0, %v3276_v51  ;;  %v3278_v53 = vpop.eup %3277  ;;  %v1215_v43 = vld [vmem:[#allocation10 + $0x128] sm:$0xff]  ;;  %v1213_v51 = vld [vmem:[#allocation10 + $0x118] sm:$0xff] }
 0x284   :  { %3281 = vtanh.f32 %v873_v37  ;;  %v881_v8 = vadd.f32 1.0, %v3278_v53  ;;  %v1211_v37 = vld [vmem:[#allocation10 + $0x108] sm:$0xff] }
 0x285   :  { %3283 = vrcp.f32 %v870_v52  ;;  %v3865_v52 = vpack.c.bf16 %v1208_v35, %v1204_v29  ;;  %v3867_v53 = vpack.c.bf16 %v1215_v43, %v1211_v37  ;;  %v3906_v29 = vpack.c.bf16 %v1241_v0, %v1237_v63  ;;  %v1236_v35 = vld [vmem:[#allocation10 + $0x1d0] sm:$0xff] }
 0x286   :  { %3285 = vrcp.f32 %v881_v8  ;;  %v1240_v37 = vld [vmem:[#allocation10 + $0x1f0] sm:$0xff]  ;;  %v3909_v43 = vpack.c.bf16 %v1238_v25, %v1234_v23 }
 0x28d   :  { %v3280_v59 = vpop.eup %3279 }
 0x28e   :  { %v3282_v5 = vpop.eup %3281  ;;  %v884_v14 = vmul.f32 %v3280_v59, %v3778_v9  ;;  %v1199_v9 = vld [vmem:[#allocation10 + $0xa8] sm:$0xff]  ;;  %v1217_v59 = vld [vmem:[#allocation10 + $0x138] sm:$0xff] }
 0x28f   :  { %v3284_v6 = vpop.eup %3283  ;;  %v3845_v20 = vpack.c.bf16 %v1199_v9, %v1195_v2  ;;  %v3870_v8 = vpack.c.bf16 %v1217_v59, %v1213_v51  ;;  %v1226_v2 = vld [vmem:[#allocation10 + $0x180] sm:$0xff]  ;;  %v3913_v51 = vpack.c.bf16 %v1240_v37, %v1236_v35 }
 0x290   :  { %v885_v18 = vmul.f32 %v3284_v6, %v3282_v5  ;;  %v3286_v21 = vpop.eup %3285  ;;  %v1210_v5 = vld [vmem:[#allocation10 + $0x100] sm:$0xff] }
 0x291   :  { %v1214_v6 = vld [vmem:[#allocation10 + $0x120] sm:$0xff] }
 0x292   :  { %v3817_v19 = vadd.f32 %v885_v18, %v884_v14  ;;  %v1212_v14 = vld [vmem:[#allocation10 + $0x110] sm:$0xff]  ;;  %v3873_v30 = vpack.c.bf16 %v1214_v6, %v1210_v5  ;;  %v1230_v9 = vld [vmem:[#allocation10 + $0x1a0] sm:$0xff] }
 0x293   :  { %v1216_v18 = vld [vmem:[#allocation10 + $0x130] sm:$0xff]  ;;  %v3897_v4 = vpack.c.bf16 %v1230_v9, %v1226_v2 }
 0x294   :  { %3287 = vtanh.f32 %v3817_v19  ;;  %v3877_v31 = vpack.c.bf16 %v1216_v18, %v1212_v14 }
 0x29e   :  { %v3288_v26 = vpop.eup %3287 }
 0x29f   :  { %v888_v27 = vmul.f32 %v3288_v26, %v3286_v21  ;;  %v1219_v21 = vld [vmem:[#allocation10 + $0x148] sm:$0xff] }
 0x2a0   :  { %v1223_v26 = vld [vmem:[#allocation10 + $0x168] sm:$0xff] }
 0x2a1   :  { %889 = vst [vmem:[#allocation11 + $0x1] sm:$0x1] %v888_v27  ;;  %1029 = vmatmul.mubr.f32.vlgmr.msra.gmra.mrb[8].mxu0 %v888_v27  ;;  %1100 = vmatmul.mubr.f32.vlgmr.msra.gmra.mrb[8].mxu1 %v888_v27  ;;  %v1221_v27 = vld [vmem:[#allocation10 + $0x158] sm:$0xff]  ;;  %v3879_v33 = vpack.c.bf16 %v1223_v26, %v1219_v21 }
 0x2a2   :  { %1306 = vmatprep.mubr.f32.mxu0 %v3523_v7  ;;  %1377 = vmatprep.mubr.f32.mxu1 %v3523_v7  ;;  %v3882_v44 = vpack.c.bf16 %v1225_v28, %v1221_v27 }
 0x2a3   :  { %2928 = vmatpush1.bf16.msra.mxu0 %v3826_v40  ;;  %2960 = vmatpush1.bf16.msra.mxu1 %v3829_v38 }
 0x2a4   :  { %2930 = vmatprep.subr.bf16.mxu0 %v3834_v48  ;;  %2962 = vmatprep.subr.bf16.mxu1 %v3836_v57 }
 0x2a7   :  { %2932 = vmatpush1.bf16.msra.mxu0 %v3838_v60  ;;  %2964 = vmatpush1.bf16.msra.mxu1 %v3841_v3 }
 0x2a8   :  { %2934 = vmatprep.subr.bf16.mxu0 %v3845_v20  ;;  %2966 = vmatprep.subr.bf16.mxu1 %v3847_v47 }
 0x2ab   :  { %2936 = vmatpush1.bf16.msra.mxu0 %v3850_v62  ;;  %2968 = vmatpush1.bf16.msra.mxu1 %v3854_v11 }
 0x2ac   :  { %2938 = vmatprep.subr.bf16.mxu0 %v3856_v12  ;;  %2970 = vmatprep.subr.bf16.mxu1 %v3858_v24 }
 0x2af   :  { %2940 = vmatpush1.bf16.msra.mxu0 %v3861_v36  ;;  %2972 = vmatpush1.bf16.msra.mxu1 %v3865_v52 }
 0x2b0   :  { %2942 = vmatprep.subr.bf16.mxu0 %v3867_v53  ;;  %2974 = vmatprep.subr.bf16.mxu1 %v3870_v8 }
 0x2b3   :  { %2944 = vmatpush1.bf16.msra.mxu0 %v3873_v30  ;;  %2976 = vmatpush1.bf16.msra.mxu1 %v3877_v31 }
 0x2b4   :  { %2946 = vmatprep.subr.bf16.mxu0 %v3879_v33  ;;  %2978 = vmatprep.subr.bf16.mxu1 %v3882_v44 }
 0x2b7   :  { %2948 = vmatpush1.bf16.msra.mxu0 %v3885_v56  ;;  %2980 = vmatpush1.bf16.msra.mxu1 %v3889_v61 }
 0x2b8   :  { %2950 = vmatprep.subr.bf16.mxu0 %v3891_v1  ;;  %2982 = vmatprep.subr.bf16.mxu1 %v3894_v16 }
 0x2bb   :  { %2952 = vmatpush1.bf16.msra.mxu0 %v3897_v4  ;;  %2984 = vmatpush1.bf16.msra.mxu1 %v3901_v13 }
 0x2bc   :  { %2954 = vmatprep.subr.bf16.mxu0 %v3903_v17  ;;  %2986 = vmatprep.subr.bf16.mxu1 %v3906_v29 }
 0x2bf   :  { %2956 = vmatpush1.bf16.msra.mxu0 %v3909_v43  ;;  %2988 = vmatpush1.bf16.msra.mxu1 %v3913_v51 }
 0x2c0   :  { %2990 = vmatprep.subr.bf16.mxu0 %v3822_v32  ;;  %3022 = vmatprep.subr.bf16.mxu1 %v3824_v39 }
 0x374   :  { %v1030_v59 = vpop.f32.mrb[8].mxu0  ;;  %v1101_v5 = vpop.f32.mrb[8].mxu1 }
 0x375   :  { %v1032_v6 = vpop.f32.mrb[9].mxu0  ;;  %v1103_v14 = vpop.f32.mrb[9].mxu1 }
 0x376   :  { %v1110_v18 = vcombine.low %v1030_v59, %v1032_v6  ;;  %v1111_v21 = vcombine.low %v1101_v5, %v1103_v14 }
 0x378   :  { %v1118_v26 = vrot.slane %v1110_v18, %v3770_v15  ;;  %v1125_v27 = vrot.slane %v1111_v21, %v3770_v15 }
 0x37a   :  { %v1126_v28 = vcombine.low %v1118_v26, %v1125_v27 }
 0x37c   :  { %v1133_v34 = vrot.slane %v1126_v28, %v3770_v15 }
 0x37e   :  { %v1135_v42 = vadd.f32 %v1133_v34, %v899_v22 }
 0x380   :  { %v2628_v45 = vmul.f32 -1.442695, %v1135_v42  ;;  %v1143_v41 = vrot.slane %v1135_v42, 1  ;;  %v1154_v49 = vrot.slane %v1135_v42, 3  ;;  %v1151_v9 = vrot.slane %v1135_v42, 2 }
 0x382   :  { %3289 = vpow2.f32 %v2628_v45  ;;  %v2629_v46 = vmul.f32 -1.442695, %v1143_v41  ;;  %v2630_v55 = vmul.f32 -1.442695, %v1154_v49 }
 0x384   :  { %3291 = vpow2.f32 %v2629_v46 }
 0x385   :  { %3293 = vpow2.f32 %v2630_v55 }
 0x38c   :  { %v3290_v2 = vpop.eup %3289 }
 0x38d   :  { %v1139_v10 = vadd.f32 1.0, %v3290_v2 }
 0x38e   :  { %v3292_v50 = vpop.eup %3291 }
 0x38f   :  { %3295 = vrcp.f32 %v1139_v10  ;;  %v1148_v54 = vadd.f32 1.0, %v3292_v50  ;;  %v3294_v58 = vpop.eup %3293 }
 0x390   :  { %3297 = vtanh.f32 %v1151_v9  ;;  %v1159_v25 = vadd.f32 1.0, %v3294_v58 }
 0x391   :  { %3299 = vrcp.f32 %v1148_v54 }
 0x392   :  { %3301 = vrcp.f32 %v1159_v25 }
 0x399   :  { %v3296_v63 = vpop.eup %3295 }
 0x39a   :  { %v3298_v0 = vpop.eup %3297  ;;  %v1162_v35 = vmul.f32 %v3296_v63, %v3817_v19 }
 0x39b   :  { %v3300_v23 = vpop.eup %3299 }
 0x39c   :  { %v1163_v37 = vmul.f32 %v3300_v23, %v3298_v0  ;;  %v3302_v5 = vpop.eup %3301 }
 0x39e   :  { %v3924_v59 = vadd.f32 %v1163_v37, %v1162_v35 }
 0x3a0   :  { %3303 = vtanh.f32 %v3924_v59 }
 0x3aa   :  { %v3304_v6 = vpop.eup %3303 }
 0x3ab   :  { %v1166_v14 = vmul.f32 %v3304_v6, %v3302_v5 }
 0x3ad   :  { %1167 = vst [vmem:[#allocation11 + $0x2] sm:$0x1] %v1166_v14  ;;  %1307 = vmatmul.mubr.f32.vlgmr.msra.gmra.mrb[10].mxu0 %v1166_v14  ;;  %1378 = vmatmul.mubr.f32.vlgmr.msra.gmra.mrb[10].mxu1 %v1166_v14 }
 0x3ae   :  { %2992 = vmatpush1.bf16.msra.mxu0 %v3826_v40  ;;  %3024 = vmatpush1.bf16.msra.mxu1 %v3829_v38 }
 0x3af   :  { %2994 = vmatprep.subr.bf16.mxu0 %v3834_v48  ;;  %3026 = vmatprep.subr.bf16.mxu1 %v3836_v57 }
 0x3b0   :  { %1584 = vmatprep.mubr.f32.mxu0 %v3523_v7  ;;  %1655 = vmatprep.mubr.f32.mxu1 %v3523_v7 }
 0x3b2   :  { %2996 = vmatpush1.bf16.msra.mxu0 %v3838_v60  ;;  %3028 = vmatpush1.bf16.msra.mxu1 %v3841_v3 }
 0x3b3   :  { %2998 = vmatprep.subr.bf16.mxu0 %v3845_v20  ;;  %3030 = vmatprep.subr.bf16.mxu1 %v3847_v47 }
 0x3b6   :  { %3000 = vmatpush1.bf16.msra.mxu0 %v3850_v62  ;;  %3032 = vmatpush1.bf16.msra.mxu1 %v3854_v11 }
 0x3b7   :  { %3002 = vmatprep.subr.bf16.mxu0 %v3856_v12  ;;  %3034 = vmatprep.subr.bf16.mxu1 %v3858_v24 }
 0x3ba   :  { %3004 = vmatpush1.bf16.msra.mxu0 %v3861_v36  ;;  %3036 = vmatpush1.bf16.msra.mxu1 %v3865_v52 }
 0x3bb   :  { %3006 = vmatprep.subr.bf16.mxu0 %v3867_v53  ;;  %3038 = vmatprep.subr.bf16.mxu1 %v3870_v8 }
 0x3be   :  { %3008 = vmatpush1.bf16.msra.mxu0 %v3873_v30  ;;  %3040 = vmatpush1.bf16.msra.mxu1 %v3877_v31 }
 0x3bf   :  { %3010 = vmatprep.subr.bf16.mxu0 %v3879_v33  ;;  %3042 = vmatprep.subr.bf16.mxu1 %v3882_v44 }
 0x3c2   :  { %3012 = vmatpush1.bf16.msra.mxu0 %v3885_v56  ;;  %3044 = vmatpush1.bf16.msra.mxu1 %v3889_v61 }
 0x3c3   :  { %3014 = vmatprep.subr.bf16.mxu0 %v3891_v1  ;;  %3046 = vmatprep.subr.bf16.mxu1 %v3894_v16 }
 0x3c6   :  { %3016 = vmatpush1.bf16.msra.mxu0 %v3897_v4  ;;  %3048 = vmatpush1.bf16.msra.mxu1 %v3901_v13 }
 0x3c7   :  { %3018 = vmatprep.subr.bf16.mxu0 %v3903_v17  ;;  %3050 = vmatprep.subr.bf16.mxu1 %v3906_v29 }
 0x3ca   :  { %3020 = vmatpush1.bf16.msra.mxu0 %v3909_v43  ;;  %3052 = vmatpush1.bf16.msra.mxu1 %v3913_v51 }
 0x3cb   :  { %3054 = vmatprep.subr.bf16.mxu0 %v3822_v32  ;;  %3086 = vmatprep.subr.bf16.mxu1 %v3824_v39  ;;  %v1177_v39 = vld [vmem:[%s1176_s3] ss:$8 sm:$0xf] }
 0x480   :  { %v1308_v19 = vpop.f32.mrb[10].mxu0  ;;  %v1379_v18 = vpop.f32.mrb[10].mxu1 }
 0x481   :  { %v1310_v21 = vpop.f32.mrb[11].mxu0  ;;  %v1381_v26 = vpop.f32.mrb[11].mxu1 }
 0x482   :  { %v1388_v27 = vcombine.low %v1308_v19, %v1310_v21  ;;  %v1389_v28 = vcombine.low %v1379_v18, %v1381_v26 }
 0x484   :  { %v1396_v34 = vrot.slane %v1388_v27, %v3770_v15  ;;  %v1403_v22 = vrot.slane %v1389_v28, %v3770_v15  ;;  %v2013_v27 = vld [vmem:[#allocation10 + $0x8] sm:$0xff] }
 0x485   :  { %v2017_v28 = vld [vmem:[#allocation10 + $0x28] sm:$0xff] }
 0x486   :  { %v1404_v42 = vcombine.low %v1396_v34, %v1403_v22  ;;  %v2015_v34 = vld [vmem:[#allocation10 + $0x18] sm:$0xff]  ;;  %v4009_v22 = vpack.c.bf16 %v2017_v28, %v2013_v27 }
 0x487   :  { %v2059_v27 = vld [vmem:[#allocation10 + $0x178] sm:$0xff] }
 0x488   :  { %v1411_v32 = vrot.slane %v1404_v42, %v3770_v15  ;;  %v2019_v42 = vld [vmem:[#allocation10 + $0x38] sm:$0xff] }
 0x48a   :  { %v1413_v45 = vadd.f32 %v1411_v32, %v1177_v39  ;;  %v2012_v32 = vld [vmem:[#allocation10] sm:$0xff] }
 0x48b   :  { %v2016_v39 = vld [vmem:[#allocation10 + $0x20] sm:$0xff] }
 0x48c   :  { %v2634_v41 = vmul.f32 -1.442695, %v1413_v45  ;;  %v1421_v46 = vrot.slane %v1413_v45, 1  ;;  %v1432_v55 = vrot.slane %v1413_v45, 3  ;;  %v1429_v10 = vrot.slane %v1413_v45, 2 }
 0x48d   :  { %v4011_v45 = vpack.c.bf16 %v2019_v42, %v2015_v34 }
 0x48e   :  { %3305 = vpow2.f32 %v2634_v41  ;;  %v2635_v49 = vmul.f32 -1.442695, %v1421_v46  ;;  %v2636_v2 = vmul.f32 -1.442695, %v1432_v55  ;;  %v4013_v41 = vpack.c.bf16 %v2016_v39, %v2012_v32  ;;  %v2014_v46 = vld [vmem:[#allocation10 + $0x10] sm:$0xff]  ;;  %v2052_v32 = vld [vmem:[#allocation10 + $0x140] sm:$0xff] }
 0x48f   :  { %v2056_v39 = vld [vmem:[#allocation10 + $0x160] sm:$0xff] }
 0x490   :  { %3307 = vpow2.f32 %v2635_v49  ;;  %v2018_v49 = vld [vmem:[#allocation10 + $0x30] sm:$0xff] }
 0x491   :  { %3309 = vpow2.f32 %v2636_v2  ;;  %v4016_v55 = vpack.c.bf16 %v2018_v49, %v2014_v46  ;;  %v2021_v2 = vld [vmem:[#allocation10 + $0x48] sm:$0xff]  ;;  %v2054_v46 = vld [vmem:[#allocation10 + $0x150] sm:$0xff] }
 0x498   :  { %v3306_v9 = vpop.eup %3305 }
 0x499   :  { %v1417_v50 = vadd.f32 1.0, %v3306_v9  ;;  %v2025_v9 = vld [vmem:[#allocation10 + $0x68] sm:$0xff] }
 0x49a   :  { %v3308_v54 = vpop.eup %3307 }
 0x49b   :  { %3311 = vrcp.f32 %v1417_v50  ;;  %v1426_v58 = vadd.f32 1.0, %v3308_v54  ;;  %v3310_v63 = vpop.eup %3309  ;;  %v4021_v50 = vpack.c.bf16 %v2025_v9, %v2021_v2  ;;  %v2027_v54 = vld [vmem:[#allocation10 + $0x78] sm:$0xff]  ;;  %v2058_v2 = vld [vmem:[#allocation10 + $0x170] sm:$0xff]  ;;  %v2061_v9 = vld [vmem:[#allocation10 + $0x188] sm:$0xff] }
 0x49c   :  { %3313 = vtanh.f32 %v1429_v10  ;;  %v1437_v35 = vadd.f32 1.0, %v3310_v63  ;;  %v2023_v10 = vld [vmem:[#allocation10 + $0x58] sm:$0xff]  ;;  %v2024_v63 = vld [vmem:[#allocation10 + $0x60] sm:$0xff] }
 0x49d   :  { %3315 = vrcp.f32 %v1426_v58  ;;  %v2020_v58 = vld [vmem:[#allocation10 + $0x40] sm:$0xff] }
 0x49e   :  { %3317 = vrcp.f32 %v1437_v35  ;;  %v2026_v35 = vld [vmem:[#allocation10 + $0x70] sm:$0xff] }
 0x4a5   :  { %v3312_v0 = vpop.eup %3311 }
 0x4a6   :  { %v3314_v23 = vpop.eup %3313  ;;  %v1440_v37 = vmul.f32 %v3312_v0, %v3924_v59  ;;  %v4023_v0 = vpack.c.bf16 %v2027_v54, %v2023_v10  ;;  %v2065_v10 = vld [vmem:[#allocation10 + $0x1a8] sm:$0xff]  ;;  %v2063_v54 = vld [vmem:[#allocation10 + $0x198] sm:$0xff] }
 0x4a7   :  { %v3316_v25 = vpop.eup %3315 }
 0x4a8   :  { %v1441_v5 = vmul.f32 %v3316_v25, %v3314_v23  ;;  %v3318_v14 = vpop.eup %3317  ;;  %v4025_v23 = vpack.c.bf16 %v2024_v63, %v2020_v58  ;;  %v2022_v25 = vld [vmem:[#allocation10 + $0x50] sm:$0xff]  ;;  %v2067_v58 = vld [vmem:[#allocation10 + $0x1b8] sm:$0xff]  ;;  %v4072_v63 = vpack.c.bf16 %v2056_v39, %v2052_v32 }
 0x4aa   :  { %v3965_v6 = vadd.f32 %v1441_v5, %v1440_v37  ;;  %v2029_v37 = vld [vmem:[#allocation10 + $0x88] sm:$0xff]  ;;  %v4028_v5 = vpack.c.bf16 %v2026_v35, %v2022_v25  ;;  %v4076_v25 = vpack.c.bf16 %v2058_v2, %v2054_v46  ;;  %v4078_v35 = vpack.c.bf16 %v2065_v10, %v2061_v9 }
 0x4ac   :  { %3319 = vtanh.f32 %v3965_v6 }
 0x4b6   :  { %v3320_v19 = vpop.eup %3319 }
 0x4b7   :  { %v1444_v18 = vmul.f32 %v3320_v19, %v3318_v14  ;;  %v2031_v14 = vld [vmem:[#allocation10 + $0x98] sm:$0xff] }
 0x4b8   :  { %v2035_v19 = vld [vmem:[#allocation10 + $0xb8] sm:$0xff] }
 0x4b9   :  { %1445 = vst [vmem:[#allocation11 + $0x3] sm:$0x1] %v1444_v18  ;;  %1585 = vmatmul.mubr.f32.vlgmr.msra.gmra.mrb[12].mxu0 %v1444_v18  ;;  %1656 = vmatmul.mubr.f32.vlgmr.msra.gmra.mrb[12].mxu1 %v1444_v18 }
 0x4ba   :  { %3056 = vmatpush1.bf16.msra.mxu0 %v3826_v40  ;;  %3088 = vmatpush1.bf16.msra.mxu1 %v3829_v38 }
 0x4bb   :  { %3058 = vmatprep.subr.bf16.mxu0 %v3834_v48  ;;  %3090 = vmatprep.subr.bf16.mxu1 %v3836_v57 }
 0x4bc   :  { %1862 = vmatprep.mubr.f32.mxu0 %v3523_v7  ;;  %1933 = vmatprep.mubr.f32.mxu1 %v3523_v7 }
 0x4be   :  { %3060 = vmatpush1.bf16.msra.mxu0 %v3838_v60  ;;  %3092 = vmatpush1.bf16.msra.mxu1 %v3841_v3 }
 0x4bf   :  { %3062 = vmatprep.subr.bf16.mxu0 %v3845_v20  ;;  %3094 = vmatprep.subr.bf16.mxu1 %v3847_v47 }
 0x4c2   :  { %3064 = vmatpush1.bf16.msra.mxu0 %v3850_v62  ;;  %3096 = vmatpush1.bf16.msra.mxu1 %v3854_v11 }
 0x4c3   :  { %3066 = vmatprep.subr.bf16.mxu0 %v3856_v12  ;;  %3098 = vmatprep.subr.bf16.mxu1 %v3858_v24  ;;  %v1455_v12 = vld [vmem:[%s1454_s10] ss:$8 sm:$0xf] }
 0x4c6   :  { %3068 = vmatpush1.bf16.msra.mxu0 %v3861_v36  ;;  %3100 = vmatpush1.bf16.msra.mxu1 %v3865_v52 }
 0x4c7   :  { %3070 = vmatprep.subr.bf16.mxu0 %v3867_v53  ;;  %3102 = vmatprep.subr.bf16.mxu1 %v3870_v8 }
 0x4ca   :  { %3072 = vmatpush1.bf16.msra.mxu0 %v3873_v30  ;;  %3104 = vmatpush1.bf16.msra.mxu1 %v3877_v31 }
 0x4cb   :  { %3074 = vmatprep.subr.bf16.mxu0 %v3879_v33  ;;  %3106 = vmatprep.subr.bf16.mxu1 %v3882_v44 }
 0x4ce   :  { %3076 = vmatpush1.bf16.msra.mxu0 %v3885_v56  ;;  %3108 = vmatpush1.bf16.msra.mxu1 %v3889_v61 }
 0x4cf   :  { %3078 = vmatprep.subr.bf16.mxu0 %v3891_v1  ;;  %3110 = vmatprep.subr.bf16.mxu1 %v3894_v16 }
 0x4d2   :  { %3080 = vmatpush1.bf16.msra.mxu0 %v3897_v4  ;;  %3112 = vmatpush1.bf16.msra.mxu1 %v3901_v13 }
 0x4d3   :  { %3082 = vmatprep.subr.bf16.mxu0 %v3903_v17  ;;  %3114 = vmatprep.subr.bf16.mxu1 %v3906_v29 }
 0x4d6   :  { %3084 = vmatpush1.bf16.msra.mxu0 %v3909_v43  ;;  %3116 = vmatpush1.bf16.msra.mxu1 %v3913_v51 }
 0x4d7   :  { %3118 = vmatprep.subr.bf16.mxu0 %v4009_v22  ;;  %3150 = vmatprep.subr.bf16.mxu1 %v4011_v45 }
 0x58c   :  { %v1586_v40 = vpop.f32.mrb[12].mxu0  ;;  %v1657_v38 = vpop.f32.mrb[12].mxu1 }
 0x58d   :  { %v1588_v48 = vpop.f32.mrb[13].mxu0  ;;  %v1659_v57 = vpop.f32.mrb[13].mxu1 }
 0x58e   :  { %v1666_v60 = vcombine.low %v1586_v40, %v1588_v48  ;;  %v1667_v3 = vcombine.low %v1657_v38, %v1659_v57  ;;  %v4034_v40 = vpack.c.bf16 %v2035_v19, %v2031_v14  ;;  %v2028_v38 = vld [vmem:[#allocation10 + $0x80] sm:$0xff]  ;;  %v2030_v57 = vld [vmem:[#allocation10 + $0x90] sm:$0xff]  ;;  %v4081_v19 = vpack.c.bf16 %v2067_v58, %v2063_v54 }
 0x58f   :  { %v2032_v48 = vld [vmem:[#allocation10 + $0xa0] sm:$0xff]  ;;  %v2062_v14 = vld [vmem:[#allocation10 + $0x190] sm:$0xff] }
 0x590   :  { %v1674_v20 = vrot.slane %v1666_v60, %v3770_v15  ;;  %v1681_v47 = vrot.slane %v1667_v3, %v3770_v15  ;;  %v4037_v60 = vpack.c.bf16 %v2032_v48, %v2028_v38  ;;  %v2034_v3 = vld [vmem:[#allocation10 + $0xb0] sm:$0xff]  ;;  %v2069_v48 = vld [vmem:[#allocation10 + $0x1c8] sm:$0xff] }
 0x591   :  { %v2066_v38 = vld [vmem:[#allocation10 + $0x1b0] sm:$0xff] }
 0x592   :  { %v1682_v62 = vcombine.low %v1674_v20, %v1681_v47  ;;  %v2037_v20 = vld [vmem:[#allocation10 + $0xc8] sm:$0xff] }
 0x593   :  { %v2041_v47 = vld [vmem:[#allocation10 + $0xe8] sm:$0xff] }
 0x594   :  { %v1689_v11 = vrot.slane %v1682_v62, %v3770_v15  ;;  %v4041_v62 = vpack.c.bf16 %v2034_v3, %v2030_v57  ;;  %v2073_v57 = vld [vmem:[#allocation10 + $0x1e8] sm:$0xff]  ;;  %v2071_v3 = vld [vmem:[#allocation10 + $0x1d8] sm:$0xff] }
 0x596   :  { %v1691_v24 = vadd.f32 %v1689_v11, %v1455_v12  ;;  %v4043_v11 = vpack.c.bf16 %v2041_v47, %v2037_v20  ;;  %v2039_v12 = vld [vmem:[#allocation10 + $0xd8] sm:$0xff] }
 0x597   :  { %v2075_v20 = vld [vmem:[#allocation10 + $0x1f8] sm:$0xff] }
 0x598   :  { %v2640_v36 = vmul.f32 -1.442695, %v1691_v24  ;;  %v1699_v52 = vrot.slane %v1691_v24, 1  ;;  %v1710_v8 = vrot.slane %v1691_v24, 3  ;;  %v1707_v33 = vrot.slane %v1691_v24, 2  ;;  %v2043_v24 = vld [vmem:[#allocation10 + $0xf8] sm:$0xff] }
 0x59a   :  { %3321 = vpow2.f32 %v2640_v36  ;;  %v2641_v53 = vmul.f32 -1.442695, %v1699_v52  ;;  %v2642_v30 = vmul.f32 -1.442695, %v1710_v8  ;;  %v2036_v36 = vld [vmem:[#allocation10 + $0xc0] sm:$0xff]  ;;  %v4045_v52 = vpack.c.bf16 %v2043_v24, %v2039_v12  ;;  %v2038_v8 = vld [vmem:[#allocation10 + $0xd0] sm:$0xff] }
 0x59b   :  { %v4088_v12 = vpack.c.bf16 %v2066_v38, %v2062_v14  ;;  %v4090_v24 = vpack.c.bf16 %v2073_v57, %v2069_v48 }
 0x59c   :  { %3323 = vpow2.f32 %v2641_v53  ;;  %v2040_v53 = vld [vmem:[#allocation10 + $0xe0] sm:$0xff] }
 0x59d   :  { %3325 = vpow2.f32 %v2642_v30  ;;  %v2042_v30 = vld [vmem:[#allocation10 + $0xf0] sm:$0xff] }
 0x5a4   :  { %v3322_v31 = vpop.eup %3321 }
 0x5a5   :  { %v1695_v44 = vadd.f32 1.0, %v3322_v31  ;;  %v4048_v31 = vpack.c.bf16 %v2040_v53, %v2036_v36  ;;  %v2068_v36 = vld [vmem:[#allocation10 + $0x1c0] sm:$0xff] }
 0x5a6   :  { %v3324_v56 = vpop.eup %3323  ;;  %v2072_v53 = vld [vmem:[#allocation10 + $0x1e0] sm:$0xff] }
 0x5a7   :  { %3327 = vrcp.f32 %v1695_v44  ;;  %v1704_v61 = vadd.f32 1.0, %v3324_v56  ;;  %v3326_v1 = vpop.eup %3325  ;;  %v2049_v44 = vld [vmem:[#allocation10 + $0x128] sm:$0xff]  ;;  %v2047_v56 = vld [vmem:[#allocation10 + $0x118] sm:$0xff] }
 0x5a8   :  { %3329 = vtanh.f32 %v1707_v33  ;;  %v1715_v17 = vadd.f32 1.0, %v3326_v1  ;;  %v2045_v33 = vld [vmem:[#allocation10 + $0x108] sm:$0xff] }
 0x5a9   :  { %3331 = vrcp.f32 %v1704_v61  ;;  %v4052_v61 = vpack.c.bf16 %v2042_v30, %v2038_v8  ;;  %v4054_v1 = vpack.c.bf16 %v2049_v44, %v2045_v33  ;;  %v4093_v8 = vpack.c.bf16 %v2075_v20, %v2071_v3  ;;  %v2070_v30 = vld [vmem:[#allocation10 + $0x1d0] sm:$0xff] }
 0x5aa   :  { %3333 = vrcp.f32 %v1715_v17  ;;  %v2074_v33 = vld [vmem:[#allocation10 + $0x1f0] sm:$0xff]  ;;  %v4096_v44 = vpack.c.bf16 %v2072_v53, %v2068_v36 }
 0x5b1   :  { %v3328_v16 = vpop.eup %3327 }
 0x5b2   :  { %v3330_v4 = vpop.eup %3329  ;;  %v1718_v29 = vmul.f32 %v3328_v16, %v3965_v6  ;;  %v2033_v6 = vld [vmem:[#allocation10 + $0xa8] sm:$0xff]  ;;  %v2051_v16 = vld [vmem:[#allocation10 + $0x138] sm:$0xff] }
 0x5b3   :  { %v3332_v13 = vpop.eup %3331  ;;  %v4032_v18 = vpack.c.bf16 %v2033_v6, %v2029_v37  ;;  %v4057_v17 = vpack.c.bf16 %v2051_v16, %v2047_v56  ;;  %v2060_v37 = vld [vmem:[#allocation10 + $0x180] sm:$0xff]  ;;  %v4100_v56 = vpack.c.bf16 %v2074_v33, %v2070_v30 }
 0x5b4   :  { %v1719_v43 = vmul.f32 %v3332_v13, %v3330_v4  ;;  %v3334_v59 = vpop.eup %3333  ;;  %v2044_v4 = vld [vmem:[#allocation10 + $0x100] sm:$0xff] }
 0x5b5   :  { %v2048_v13 = vld [vmem:[#allocation10 + $0x120] sm:$0xff] }
 0x5b6   :  { %v4004_v51 = vadd.f32 %v1719_v43, %v1718_v29  ;;  %v2046_v29 = vld [vmem:[#allocation10 + $0x110] sm:$0xff]  ;;  %v4060_v28 = vpack.c.bf16 %v2048_v13, %v2044_v4  ;;  %v2064_v6 = vld [vmem:[#allocation10 + $0x1a0] sm:$0xff] }
 0x5b7   :  { %v2050_v43 = vld [vmem:[#allocation10 + $0x130] sm:$0xff]  ;;  %v4084_v47 = vpack.c.bf16 %v2064_v6, %v2060_v37 }
 0x5b8   :  { %3335 = vtanh.f32 %v4004_v51  ;;  %v4064_v34 = vpack.c.bf16 %v2050_v43, %v2046_v29 }
 0x5c2   :  { %v3336_v21 = vpop.eup %3335 }
 0x5c3   :  { %v1722_v26 = vmul.f32 %v3336_v21, %v3334_v59  ;;  %v2053_v59 = vld [vmem:[#allocation10 + $0x148] sm:$0xff] }
 0x5c4   :  { %v2057_v21 = vld [vmem:[#allocation10 + $0x168] sm:$0xff] }
 0x5c5   :  { %1723 = vst [vmem:[#allocation11 + $0x4] sm:$0x1] %v1722_v26  ;;  %1863 = vmatmul.mubr.f32.vlgmr.msra.gmra.mrb[14].mxu0 %v1722_v26  ;;  %1934 = vmatmul.mubr.f32.vlgmr.msra.gmra.mrb[14].mxu1 %v1722_v26  ;;  %v2055_v26 = vld [vmem:[#allocation10 + $0x158] sm:$0xff]  ;;  %v4066_v42 = vpack.c.bf16 %v2057_v21, %v2053_v59 }
 0x5c6   :  { %2140 = vmatprep.mubr.f32.mxu0 %v3523_v7  ;;  %2211 = vmatprep.mubr.f32.mxu1 %v3523_v7  ;;  %v4069_v49 = vpack.c.bf16 %v2059_v27, %v2055_v26 }
 0x5c7   :  { %3120 = vmatpush1.bf16.msra.mxu0 %v4013_v41  ;;  %3152 = vmatpush1.bf16.msra.mxu1 %v4016_v55 }
 0x5c8   :  { %3122 = vmatprep.subr.bf16.mxu0 %v4021_v50  ;;  %3154 = vmatprep.subr.bf16.mxu1 %v4023_v0 }
 0x5cb   :  { %3124 = vmatpush1.bf16.msra.mxu0 %v4025_v23  ;;  %3156 = vmatpush1.bf16.msra.mxu1 %v4028_v5 }
 0x5cc   :  { %3126 = vmatprep.subr.bf16.mxu0 %v4032_v18  ;;  %3158 = vmatprep.subr.bf16.mxu1 %v4034_v40 }
 0x5cf   :  { %3128 = vmatpush1.bf16.msra.mxu0 %v4037_v60  ;;  %3160 = vmatpush1.bf16.msra.mxu1 %v4041_v62 }
 0x5d0   :  { %3130 = vmatprep.subr.bf16.mxu0 %v4043_v11  ;;  %3162 = vmatprep.subr.bf16.mxu1 %v4045_v52 }
 0x5d3   :  { %3132 = vmatpush1.bf16.msra.mxu0 %v4048_v31  ;;  %3164 = vmatpush1.bf16.msra.mxu1 %v4052_v61 }
 0x5d4   :  { %3134 = vmatprep.subr.bf16.mxu0 %v4054_v1  ;;  %3166 = vmatprep.subr.bf16.mxu1 %v4057_v17 }
 0x5d7   :  { %3136 = vmatpush1.bf16.msra.mxu0 %v4060_v28  ;;  %3168 = vmatpush1.bf16.msra.mxu1 %v4064_v34 }
 0x5d8   :  { %3138 = vmatprep.subr.bf16.mxu0 %v4066_v42  ;;  %3170 = vmatprep.subr.bf16.mxu1 %v4069_v49 }
 0x5db   :  { %3140 = vmatpush1.bf16.msra.mxu0 %v4072_v63  ;;  %3172 = vmatpush1.bf16.msra.mxu1 %v4076_v25 }
 0x5dc   :  { %3142 = vmatprep.subr.bf16.mxu0 %v4078_v35  ;;  %3174 = vmatprep.subr.bf16.mxu1 %v4081_v19 }
 0x5df   :  { %3144 = vmatpush1.bf16.msra.mxu0 %v4084_v47  ;;  %3176 = vmatpush1.bf16.msra.mxu1 %v4088_v12 }
 0x5e0   :  { %3146 = vmatprep.subr.bf16.mxu0 %v4090_v24  ;;  %3178 = vmatprep.subr.bf16.mxu1 %v4093_v8 }
 0x5e3   :  { %3148 = vmatpush1.bf16.msra.mxu0 %v4096_v44  ;;  %3180 = vmatpush1.bf16.msra.mxu1 %v4100_v56 }
 0x5e4   :  { %3182 = vmatprep.subr.bf16.mxu0 %v4009_v22  ;;  %3214 = vmatprep.subr.bf16.mxu1 %v4011_v45  ;;  %v1733_v45 = vld [vmem:[%s1732_s6] ss:$8 sm:$0xf] }
 0x698   :  { %v1864_v16 = vpop.f32.mrb[14].mxu0  ;;  %v1935_v4 = vpop.f32.mrb[14].mxu1 }
 0x699   :  { %v1866_v13 = vpop.f32.mrb[15].mxu0  ;;  %v1937_v29 = vpop.f32.mrb[15].mxu1 }
 0x69a   :  { %v1944_v43 = vcombine.low %v1864_v16, %v1866_v13  ;;  %v1945_v59 = vcombine.low %v1935_v4, %v1937_v29 }
 0x69c   :  { %v1952_v21 = vrot.slane %v1944_v43, %v3770_v15  ;;  %v1959_v26 = vrot.slane %v1945_v59, %v3770_v15 }
 0x69e   :  { %v1960_v27 = vcombine.low %v1952_v21, %v1959_v26 }
 0x6a0   :  { %v1967_v22 = vrot.slane %v1960_v27, %v3770_v15 }
 0x6a2   :  { %v1969_v32 = vadd.f32 %v1967_v22, %v1733_v45 }
 0x6a4   :  { %v2646_v39 = vmul.f32 -1.442695, %v1969_v32  ;;  %v1977_v46 = vrot.slane %v1969_v32, 1  ;;  %v1988_v9 = vrot.slane %v1969_v32, 3  ;;  %v1985_v58 = vrot.slane %v1969_v32, 2 }
 0x6a6   :  { %3337 = vpow2.f32 %v2646_v39  ;;  %v2647_v2 = vmul.f32 -1.442695, %v1977_v46  ;;  %v2648_v10 = vmul.f32 -1.442695, %v1988_v9 }
 0x6a7   :  { %v2289_v46 = vld [vmem:[%s2288_s29] ss:$8 sm:$0xf] }
 0x6a8   :  { %3339 = vpow2.f32 %v2647_v2 }
 0x6a9   :  { %3341 = vpow2.f32 %v2648_v10 }
 0x6b0   :  { %v3338_v54 = vpop.eup %3337 }
 0x6b1   :  { %v1973_v37 = vadd.f32 1.0, %v3338_v54 }
 0x6b2   :  { %v3340_v6 = vpop.eup %3339 }
 0x6b3   :  { %3343 = vrcp.f32 %v1973_v37  ;;  %v1982_v14 = vadd.f32 1.0, %v3340_v6  ;;  %v3342_v38 = vpop.eup %3341 }
 0x6b4   :  { %3345 = vtanh.f32 %v1985_v58  ;;  %v1993_v20 = vadd.f32 1.0, %v3342_v38 }
 0x6b5   :  { %3347 = vrcp.f32 %v1982_v14 }
 0x6b6   :  { %3349 = vrcp.f32 %v1993_v20 }
 0x6bd   :  { %v3344_v48 = vpop.eup %3343 }
 0x6be   :  { %v3346_v57 = vpop.eup %3345  ;;  %v1996_v36 = vmul.f32 %v3344_v48, %v4004_v51 }
 0x6bf   :  { %v3348_v3 = vpop.eup %3347 }
 0x6c0   :  { %v1997_v53 = vmul.f32 %v3348_v3, %v3346_v57  ;;  %v3350_v33 = vpop.eup %3349 }
 0x6c2   :  { %v4111_v30 = vadd.f32 %v1997_v53, %v1996_v36 }
 0x6c4   :  { %3351 = vtanh.f32 %v4111_v30 }
 0x6ce   :  { %v3352_v16 = vpop.eup %3351 }
 0x6cf   :  { %v2000_v4 = vmul.f32 %v3352_v16, %v3350_v33 }
 0x6d1   :  { %2001 = vst [vmem:[#allocation11 + $0x5] sm:$0x1] %v2000_v4  ;;  %2141 = vmatmul.mubr.f32.vlgmr.msra.gmra.mrb[16].mxu0 %v2000_v4  ;;  %2212 = vmatmul.mubr.f32.vlgmr.msra.gmra.mrb[16].mxu1 %v2000_v4 }
 0x6d2   :  { %3184 = vmatpush1.bf16.msra.mxu0 %v4013_v41  ;;  %3216 = vmatpush1.bf16.msra.mxu1 %v4016_v55 }
 0x6d3   :  { %3186 = vmatprep.subr.bf16.mxu0 %v4021_v50  ;;  %3218 = vmatprep.subr.bf16.mxu1 %v4023_v0 }
 0x6d4   :  { %2418 = vmatprep.mubr.f32.mxu0 %v3523_v7  ;;  %2489 = vmatprep.mubr.f32.mxu1 %v3523_v7 }
 0x6d6   :  { %3188 = vmatpush1.bf16.msra.mxu0 %v4025_v23  ;;  %3220 = vmatpush1.bf16.msra.mxu1 %v4028_v5 }
 0x6d7   :  { %3190 = vmatprep.subr.bf16.mxu0 %v4032_v18  ;;  %3222 = vmatprep.subr.bf16.mxu1 %v4034_v40 }
 0x6da   :  { %3192 = vmatpush1.bf16.msra.mxu0 %v4037_v60  ;;  %3224 = vmatpush1.bf16.msra.mxu1 %v4041_v62  ;;  %v2011_v60 = vld [vmem:[%s2010_s22] ss:$8 sm:$0xf] }
 0x6db   :  { %3194 = vmatprep.subr.bf16.mxu0 %v4043_v11  ;;  %3226 = vmatprep.subr.bf16.mxu1 %v4045_v52 }
 0x6de   :  { %3196 = vmatpush1.bf16.msra.mxu0 %v4048_v31  ;;  %3228 = vmatpush1.bf16.msra.mxu1 %v4052_v61 }
 0x6df   :  { %3198 = vmatprep.subr.bf16.mxu0 %v4054_v1  ;;  %3230 = vmatprep.subr.bf16.mxu1 %v4057_v17 }
 0x6e2   :  { %3200 = vmatpush1.bf16.msra.mxu0 %v4060_v28  ;;  %3232 = vmatpush1.bf16.msra.mxu1 %v4064_v34 }
 0x6e3   :  { %3202 = vmatprep.subr.bf16.mxu0 %v4066_v42  ;;  %3234 = vmatprep.subr.bf16.mxu1 %v4069_v49 }
 0x6e6   :  { %3204 = vmatpush1.bf16.msra.mxu0 %v4072_v63  ;;  %3236 = vmatpush1.bf16.msra.mxu1 %v4076_v25 }
 0x6e7   :  { %3206 = vmatprep.subr.bf16.mxu0 %v4078_v35  ;;  %3238 = vmatprep.subr.bf16.mxu1 %v4081_v19 }
 0x6ea   :  { %3208 = vmatpush1.bf16.msra.mxu0 %v4084_v47  ;;  %3240 = vmatpush1.bf16.msra.mxu1 %v4088_v12 }
 0x6eb   :  { %3210 = vmatprep.subr.bf16.mxu0 %v4090_v24  ;;  %3242 = vmatprep.subr.bf16.mxu1 %v4093_v8 }
 0x6ee   :  { %3212 = vmatpush1.bf16.msra.mxu0 %v4096_v44  ;;  %3244 = vmatpush1.bf16.msra.mxu1 %v4100_v56 }
 0x7a4   :  { %v2142_v7 = vpop.f32.mrb[16].mxu0  ;;  %v2213_v51 = vpop.f32.mrb[16].mxu1 }
 0x7a5   :  { %v2144_v41 = vpop.f32.mrb[17].mxu0  ;;  %v2215_v55 = vpop.f32.mrb[17].mxu1 }
 0x7a6   :  { %v2222_v50 = vcombine.low %v2142_v7, %v2144_v41  ;;  %v2223_v0 = vcombine.low %v2213_v51, %v2215_v55 }
 0x7a8   :  { %v2230_v23 = vrot.slane %v2222_v50, %v3770_v15  ;;  %v2237_v5 = vrot.slane %v2223_v0, %v3770_v15 }
 0x7aa   :  { %v2238_v18 = vcombine.low %v2230_v23, %v2237_v5 }
 0x7ac   :  { %v2245_v40 = vrot.slane %v2238_v18, %v3770_v15 }
 0x7ae   :  { %v2247_v62 = vadd.f32 %v2245_v40, %v2011_v60 }
 0x7b0   :  { %v2652_v11 = vmul.f32 -1.442695, %v2247_v62  ;;  %v2255_v52 = vrot.slane %v2247_v62, 1  ;;  %v2266_v61 = vrot.slane %v2247_v62, 3  ;;  %v2263_v28 = vrot.slane %v2247_v62, 2 }
 0x7b2   :  { %3353 = vpow2.f32 %v2652_v11  ;;  %v2653_v31 = vmul.f32 -1.442695, %v2255_v52  ;;  %v2654_v1 = vmul.f32 -1.442695, %v2266_v61 }
 0x7b4   :  { %3355 = vpow2.f32 %v2653_v31 }
 0x7b5   :  { %3357 = vpow2.f32 %v2654_v1 }
 0x7bc   :  { %v3354_v17 = vpop.eup %3353 }
 0x7bd   :  { %v2251_v34 = vadd.f32 1.0, %v3354_v17 }
 0x7be   :  { %v3356_v42 = vpop.eup %3355 }
 0x7bf   :  { %3359 = vrcp.f32 %v2251_v34  ;;  %v2260_v49 = vadd.f32 1.0, %v3356_v42  ;;  %v3358_v63 = vpop.eup %3357 }
 0x7c0   :  { %3361 = vtanh.f32 %v2263_v28  ;;  %v2271_v47 = vadd.f32 1.0, %v3358_v63 }
 0x7c1   :  { %3363 = vrcp.f32 %v2260_v49 }
 0x7c2   :  { %3365 = vrcp.f32 %v2271_v47 }
 0x7c9   :  { %v3360_v25 = vpop.eup %3359 }
 0x7ca   :  { %v3362_v35 = vpop.eup %3361  ;;  %v2274_v12 = vmul.f32 %v3360_v25, %v4111_v30 }
 0x7cb   :  { %v3364_v19 = vpop.eup %3363 }
 0x7cc   :  { %v2275_v24 = vmul.f32 %v3364_v19, %v3362_v35  ;;  %v3366_v44 = vpop.eup %3365 }
 0x7ce   :  { %v2276_v8 = vadd.f32 %v2275_v24, %v2274_v12 }
 0x7d0   :  { %3367 = vtanh.f32 %v2276_v8 }
 0x7da   :  { %v3368_v56 = vpop.eup %3367 }
 0x7db   :  { %v2278_v13 = vmul.f32 %v3368_v56, %v3366_v44 }
 0x7dd   :  { %2279 = vst [vmem:[#allocation11 + $0x6] sm:$0x1] %v2278_v13  ;;  %2419 = vmatmul.mubr.f32.vlgmr.msra.gmra.mrb[18].mxu0 %v2278_v13  ;;  %2490 = vmatmul.mubr.f32.vlgmr.msra.gmra.mrb[18].mxu1 %v2278_v13 }
 0x8b0   :  { %v2420_v29 = vpop.f32.mrb[18].mxu0  ;;  %v2491_v43 = vpop.f32.mrb[18].mxu1 }
 0x8b1   :  { %v2422_v59 = vpop.f32.mrb[19].mxu0  ;;  %v2493_v21 = vpop.f32.mrb[19].mxu1 }
 0x8b2   :  { %v2500_v26 = vcombine.low %v2420_v29, %v2422_v59  ;;  %v2501_v27 = vcombine.low %v2491_v43, %v2493_v21 }
 0x8b4   :  { %v2508_v22 = vrot.slane %v2500_v26, %v3770_v15  ;;  %v2515_v45 = vrot.slane %v2501_v27, %v3770_v15 }
 0x8b6   :  { %v2516_v32 = vcombine.low %v2508_v22, %v2515_v45 }
 0x8b8   :  { %v2523_v39 = vrot.slane %v2516_v32, %v3770_v15 }
 0x8ba   :  { %v2525_v2 = vadd.f32 %v2523_v39, %v2289_v46 }
 0x8bc   :  { %v2658_v9 = vmul.f32 -1.442695, %v2525_v2  ;;  %v2533_v10 = vrot.slane %v2525_v2, 1  ;;  %v2544_v58 = vrot.slane %v2525_v2, 3  ;;  %v2541_v14 = vrot.slane %v2525_v2, 2 }
 0x8be   :  { %3369 = vpow2.f32 %v2658_v9  ;;  %v2659_v54 = vmul.f32 -1.442695, %v2533_v10  ;;  %v2660_v37 = vmul.f32 -1.442695, %v2544_v58 }
 0x8c0   :  { %3371 = vpow2.f32 %v2659_v54 }
 0x8c1   :  { %3373 = vpow2.f32 %v2660_v37 }
 0x8c8   :  { %v3370_v6 = vpop.eup %3369 }
 0x8c9   :  { %v2529_v38 = vadd.f32 1.0, %v3370_v6 }
 0x8ca   :  { %v3372_v48 = vpop.eup %3371 }
 0x8cb   :  { %3375 = vrcp.f32 %v2529_v38  ;;  %v2538_v57 = vadd.f32 1.0, %v3372_v48  ;;  %v3374_v15 = vpop.eup %3373 }
 0x8cc   :  { %3377 = vtanh.f32 %v2541_v14  ;;  %v2549_v53 = vadd.f32 1.0, %v3374_v15 }
 0x8cd   :  { %3379 = vrcp.f32 %v2538_v57 }
 0x8ce   :  { %3381 = vrcp.f32 %v2549_v53 }
 0x8d5   :  { %v3376_v3 = vpop.eup %3375 }
 0x8d6   :  { %v3378_v20 = vpop.eup %3377  ;;  %v2552_v30 = vmul.f32 %v3376_v3, %v2276_v8 }
 0x8d7   :  { %v3380_v36 = vpop.eup %3379 }
 0x8d8   :  { %v2553_v33 = vmul.f32 %v3380_v36, %v3378_v20 }
 0x8da   :  { %v2554_v16 = vadd.f32 %v2553_v33, %v2552_v30 }
 0x8dc   :  { %2558 = vst [vmem:[#allocation12] sm:$0x1] %v2554_v16  ;;  %3383 = vtanh.f32 %v2554_v16 }
 0x8dd   :  { %3472 = shalt.err (!%p3469_p3)
}
 0x8de   :  { %s3473_s5 = scalar_lea.hbm %s4185_s8, 16 }
 0x8df   :  { %p3474_p4 = scmp.ne.s32.totalorder %s4185_s8, %s3473_s5  ;;  %p3477_p5 = scmp.lt.u32.totalorder %s3473_s5, %s4185_s8 }
 0x8e1   :  { %p3479_p6 = pnand %p3477_p5, %p3474_p4 }
 0x8e3   :  { %3482 = shalt.err (!%p3479_p6)
}
 0x8e4   :  { %2578 = dma.vmem_to_hbm [thread:$0]  %s2576_s30, 16, %s4185_s8, [#allocation13]   ;;  %v3382_v4 = vpop.eup %3381 }
 0x8e5   :  { %s3526_s13 = smov [#allocation11]  }
 0x8e6   :  { %s2565_s14 = sshll.u32 %s3526_s13, 4  ;;  %v3384_v7 = vpop.eup %3383  ;;  %s2566_s14 = int_to_ptr.vmem [resolvable:$true] %s2565_s14 }
 0x8e7   :  { %v2556_v51 = vmul.f32 %v3384_v7, %v3382_v4  ;;  %s3483_s17 = scalar_lea.vmem %s2566_s14, 128  ;;  %p3488_p8 = scmp.lt.s32.totalorder %s2566_s14, %s2566_s14 }
 0x8e8   :  { %p3484_p7 = scmp.ne.s32.totalorder %s2566_s14, %s3483_s17  ;;  %p3489_p9 = scmp.lt.s32.totalorder %s3483_s17, %s3483_s17 }
 0x8e9   :  { %2557 = vst [vmem:[#allocation11 + $0x7] sm:$0x1] %v2556_v51 }
 0x8ea   :  { %p3490_p10 = por %p3489_p9, %p3488_p8 }
 0x8ec   :  { %p3491_p11 = pnand %p3490_p10, %p3484_p7 }
 0x8ee   :  { %3494 = shalt.err (!%p3491_p11)
}
 0x8ef   :  { %s3495_s18 = scalar_lea.hbm %s4184_s7, 128 }
 0x8f0   :  { %p3496_p12 = scmp.ne.s32.totalorder %s4184_s7, %s3495_s18  ;;  %p3499_p13 = scmp.lt.u32.totalorder %s3495_s18, %s4184_s7 }
 0x8f2   :  { %p3501_p0 = pnand %p3499_p13, %p3496_p12 }
 0x8f4   :  { %3504 = shalt.err (!%p3501_p0)
}
 0x8f5   :  { %2568 = dma.vmem_to_hbm [thread:$0]  %s2566_s14, 128, %s4184_s7, [#allocation5]  }
 0x8f6   :  { %3511 = dma.done.wait [#allocation5], 128  }
 0x8f7   :  { %3512 = vsyncadd [#allocation5], 4294967168 }
 0x8f8   :  { %3513 = dma.done.wait [#allocation13], 16  }
 0x8f9   :  { %3514 = vsyncadd [#allocation13], 4294967280 }
 0x8fa   :  { %2585 = vsyncpa [#allocation4], 1 }
 0x8fb   :  { %2586 = vsyncpa [#allocation9], 1 }
 0x8fc   :  { %2587 = vsyncpa [#allocation5], 1 }
 0x8fd   :  { %2588 = vsyncpa [#allocation13], 1 }
 0x8fe   :  { %2589 = vsyncpa [#allocation6], 1 }

</bundles_post_ra>
